<compile_context>
chip_gen: v7x
topology: tpu7x:2x2x1
jax: 0.10.0
libtpu: 0.0.40
codegen_flags: <defaults>
</compile_context>

<pallas_src>
import functools
import math

import jax
import jax.numpy as jnp
from jax.experimental import pallas as pl
from jax.experimental.pallas import tpu as pltpu

NUM_CLASSES = 40
BN_EPS = 1e-5

RGB_MEAN = jnp.array([0.493, 0.468, 0.438], jnp.float32)
RGB_STD = jnp.array([0.544, 0.521, 0.499], jnp.float32)
DEPTH_MEAN = jnp.array([0.213], jnp.float32)
DEPTH_STD = jnp.array([0.285], jnp.float32)

_VMEM_LIMIT = 48 * 1024 * 1024          # raised scoped-VMEM limit (v5e default is 16 MiB)
_TILE_VMEM_BUDGET = 40 * 1024 * 1024    # keep tile working set under this (v7x headroom)

try:
    _DEV_KIND = jax.devices()[0].device_kind.lower()
except Exception:  # pragma: no cover
    _DEV_KIND = ""
# v5e's MXU is 4x128x128 -> prefer 128-wide N tiles there.
_IS_V5E = ("v5e" in _DEV_KIND) or ("v5 lite" in _DEV_KIND) or ("v5lite" in _DEV_KIND)
_TN_CAP = 128 if _IS_V5E else 256


def _round_up(n, m):
    return ((n + m - 1) // m) * m


# ----------------------------------------------------------------------------
# Pallas kernels
# ----------------------------------------------------------------------------

def _mm_kernel(*refs, relu, res_mode):
    """Single-K-block matmul with fused bias, optional residual (pre/post ReLU) and ReLU."""
    if res_mode is None:
        a_ref, w_ref, b_ref, o_ref = refs
        r_ref = None
    else:
        a_ref, w_ref, b_ref, r_ref, o_ref = refs
    out = jnp.dot(a_ref[...], w_ref[...],
                  preferred_element_type=jnp.float32) + b_ref[...]
    if res_mode == "pre":
        out = out + r_ref[...].astype(jnp.float32)
    if relu:
        out = jnp.maximum(out, 0.0)
    if res_mode == "post":
        out = out + r_ref[...].astype(jnp.float32)
    o_ref[...] = out.astype(o_ref.dtype)


def _select_tn(N):
    if N <= _TN_CAP:
        return N, N
    if N % _TN_CAP == 0:
        return _TN_CAP, N
    if N <= 256:
        return N, N                      # full-dim block, no padding (e.g. N=160)
    if N % 128 == 0:
        return 128, N
    return 128, _round_up(N, 128)        # rare pad fallback


def _select_tm(M, K, tn, has_res, out_bytes):
    def vmem(tm):
        b = 2 * (tm * K * 2 + K * tn * 2)          # double-buffered A and W (bf16)
        b += 2 * tm * tn * out_bytes               # double-buffered output
        if has_res:
            b += 2 * tm * tn * 2                   # double-buffered residual (bf16)
        b += tm * tn * 8                           # f32 epilogue slack
        return b

    cands = ([M] if M <= 1024 else []) + [1024, 512, 384, 256, 128]
    best = None
    for tm in cands:
        if vmem(tm) > _TILE_VMEM_BUDGET:
            continue
        key = (_round_up(M, tm), -tm)              # minimize padding, then prefer larger
        if best is None or key < best[0]:
            best = (key, tm)
    return 128 if best is None else best[1]


def fused_matmul(a, w, bias, residual=None, *, relu, res_mode=None,
                 out_dtype=jnp.bfloat16):
    """out = act((a @ w) + bias [+ residual]); bias broadcasts per column.
       a/w fed to the MXU as bf16; accumulation + epilogue in f32.  The full K reduction is
       taken in one block (max K in this network is 4608, well within the VMEM budget)."""
    M, K = a.shape
    K2, N = w.shape
    assert K == K2
    assert (residual is None) == (res_mode is None)

    tn, Np = _select_tn(N)
    out_bytes = jnp.dtype(out_dtype).itemsize
    tm = _select_tm(M, K, tn, residual is not None, out_bytes)
    Mp = _round_up(M, tm)

    a_p = a.astype(jnp.bfloat16)
    if Mp != M:
        a_p = jnp.pad(a_p, ((0, Mp - M), (0, 0)))
    w_p = w.astype(jnp.bfloat16)
    b_p = bias.astype(jnp.float32).reshape(1, N)
    if Np != N:
        w_p = jnp.pad(w_p, ((0, 0), (0, Np - N)))
        b_p = jnp.pad(b_p, ((0, 0), (0, Np - N)))

    inputs = [a_p, w_p, b_p]
    in_specs = [
        pl.BlockSpec((tm, K), lambda i, j: (i, 0)),
        pl.BlockSpec((K, tn), lambda i, j: (0, j)),
        pl.BlockSpec((1, tn), lambda i, j: (0, j)),
    ]
    if res_mode is not None:
        r_p = residual.reshape(M, N).astype(jnp.bfloat16)
        if Mp != M or Np != N:
            r_p = jnp.pad(r_p, ((0, Mp - M), (0, Np - N)))
        inputs.append(r_p)
        in_specs.append(pl.BlockSpec((tm, tn), lambda i, j: (i, j)))

    out = pl.pallas_call(
        functools.partial(_mm_kernel, relu=relu, res_mode=res_mode),
        out_shape=jax.ShapeDtypeStruct((Mp, Np), out_dtype),
        grid=(Mp // tm, Np // tn),
        in_specs=in_specs,
        out_specs=pl.BlockSpec((tm, tn), lambda i, j: (i, j)),
        compiler_params=pltpu.CompilerParams(
            dimension_semantics=("parallel", "parallel"),
            vmem_limit_bytes=_VMEM_LIMIT),
    )(*inputs)
    if Mp != M or Np != N:
        out = out[:M, :N]
    return out


def _add_kernel(a_ref, b_ref, o_ref, *, relu):
    y = a_ref[...].astype(jnp.float32) + b_ref[...].astype(jnp.float32)
    if relu:
        y = jnp.maximum(y, 0.0)
    o_ref[...] = y.astype(o_ref.dtype)


@functools.partial(jax.jit, static_argnames=("relu",))
def add_act(a, b, *, relu=False):
    """Elementwise add (+ optional ReLU), lane-dense (rows, LANE) tiling, no pad copies in
       the common (LANE-divisible) case."""
    shape, dtype = a.shape, a.dtype
    total = a.size
    lane = next((L for L in (512, 256, 128) if total % L == 0), None)
    if lane is None:                      # rare fallback
        lane = 128
        rows = _round_up(pl.cdiv(total, lane), 8)
        pad = rows * lane - total
        a_f = jnp.pad(a.reshape(-1), (0, pad))
        b_f = jnp.pad(b.reshape(-1), (0, pad))
    else:
        rows = total // lane
        a_f, b_f = a.reshape(-1), b.reshape(-1)
    cands = (1024, 512, 256, 128, 64, 32, 16, 8)
    # prefer >= 2 row blocks so both TensorCores get work on v7x
    tm = next((t for t in cands if rows % t == 0 and rows // t >= 2),
              next((t for t in cands if rows % t == 0), rows))
    out = pl.pallas_call(
        functools.partial(_add_kernel, relu=relu),
        out_shape=jax.ShapeDtypeStruct((rows, lane), dtype),
        grid=(rows // tm,),
        in_specs=[pl.BlockSpec((tm, lane), lambda i: (i, 0)),
                  pl.BlockSpec((tm, lane), lambda i: (i, 0))],
        out_specs=pl.BlockSpec((tm, lane), lambda i: (i, 0)),
        compiler_params=pltpu.CompilerParams(dimension_semantics=("parallel",)),
    )(a_f.reshape(rows, lane), b_f.reshape(rows, lane))
    return out.reshape(-1)[:total].reshape(shape)


def _predict_kernel(s_ref, o_ref):
    """softmax over classes; pred = argmax+1 (float); pred=1 where max prob < 0.8."""
    x = s_ref[...].astype(jnp.float32)                 # (TM, C) with C = full class dim
    m = jnp.max(x, axis=-1, keepdims=True)
    sum_e = jnp.sum(jnp.exp(x - m), axis=-1, keepdims=True)
    pmax = 1.0 / sum_e                                 # softmax prob of the argmax class
    C = x.shape[-1]
    lane = jax.lax.broadcasted_iota(jnp.float32, x.shape, 1)
    idx = jnp.min(jnp.where(x == m, lane, float(C)), axis=-1, keepdims=True)
    pred = idx + 1.0
    o_ref[...] = jnp.where(pmax < 0.8, 1.0, pred)


@jax.jit
def predict_rows(scores2d):
    """Per-row softmax / argmax / 0.8-threshold prediction.  scores2d: (M, num_classes)."""
    M, C = scores2d.shape
    cands = (1024, 512, 256, 128, 64, 32, 16, 8)
    tm = next((t for t in cands if M % t == 0 and M // t >= 2),
              next((t for t in cands if M % t == 0), None))
    if tm is None:
        Mp = _round_up(M, 8)
        scores2d = jnp.pad(scores2d, ((0, Mp - M), (0, 0)))
        tm = 8
    else:
        Mp = M
    out = pl.pallas_call(
        _predict_kernel,
        out_shape=jax.ShapeDtypeStruct((Mp, 1), jnp.float32),
        grid=(Mp // tm,),
        in_specs=[pl.BlockSpec((tm, C), lambda i: (i, 0))],
        out_specs=pl.BlockSpec((tm, 1), lambda i: (i, 0)),
        compiler_params=pltpu.CompilerParams(dimension_semantics=("parallel",)),
    )(scores2d.astype(jnp.float32))
    return out[:M, 0]


# ----------------------------------------------------------------------------
# Conv / deconv wrappers (im2col glue in JAX, matmul + epilogue in Pallas)
# ----------------------------------------------------------------------------

@functools.partial(jax.jit,
                   static_argnames=("stride", "pad", "relu", "res_mode", "out_dtype"))
def conv_bn_act(x, w, bias, residual=None, *, stride, pad, relu, res_mode=None,
                out_dtype=jnp.bfloat16):
    """Conv2d(bias=False) + folded eval-mode BatchNorm + optional fused residual + ReLU.
       x: (N,H,W,Cin);  w: (KH,KW,Cin,Cout) bf16 with BN scale already folded."""
    N, H, W, Cin = x.shape
    KH, KW, _, Cout = w.shape
    Ho = (H + 2 * pad - KH) // stride + 1
    Wo = (W + 2 * pad - KW) // stride + 1
    x = x.astype(jnp.bfloat16)
    if pad:
        x = jnp.pad(x, ((0, 0), (pad, pad), (pad, pad), (0, 0)))
    if KH == 1 and KW == 1:
        if stride != 1:
            x = x[:, ::stride, ::stride, :]
        a = x.reshape(N * Ho * Wo, Cin)
    else:
        # TODO(synk): replace materialized im2col with in-kernel window gathering
        # (pl.ANY HBM ref + per-tap accumulation) to cut HBM traffic a further ~5-9x.
        cols = [x[:, kh:kh + (Ho - 1) * stride + 1:stride,
                  kw:kw + (Wo - 1) * stride + 1:stride, :]
                for kh in range(KH) for kw in range(KW)]
        a = jnp.concatenate(cols, axis=-1).reshape(N * Ho * Wo, KH * KW * Cin)
    y = fused_matmul(a, w.reshape(KH * KW * Cin, Cout), bias, residual,
                     relu=relu, res_mode=res_mode, out_dtype=out_dtype)
    return y.reshape(N, Ho, Wo, Cout)


@jax.jit
def transposed_s2_block(h, x, wbig, bias):
    """Fused stride-2 TransBasicBlock tail:
         relu( BN2(ConvTranspose(k3,s2,p1,op1)(h)) + BN_up(ConvTranspose(k2,s2)(x)) )
       computed sub-pixel (phase) decomposed as ONE matmul:
         A = [h(m,n) | h(m,n+1) | h(m+1,n) | h(m+1,n+1) | x(m,n)]   (M, 5*Cin)
         W = block-structured (5*Cin, 4*Cout), BN scales folded at init.
       Output phases are interleaved to (N, 2H, 2W, Cout) once at the end."""
    N, H, Wd, C = h.shape
    Cout = wbig.shape[-1] // 4
    hb = h.astype(jnp.bfloat16)
    hp = jnp.pad(hb, ((0, 0), (0, 1), (0, 1), (0, 0)))      # zero row/col for m+1 / n+1 taps
    a = jnp.concatenate([
        hb,                                # h[m, n]
        hp[:, :H, 1:Wd + 1, :],            # h[m, n+1]
        hp[:, 1:H + 1, :Wd, :],            # h[m+1, n]
        hp[:, 1:H + 1, 1:Wd + 1, :],       # h[m+1, n+1]
        x.astype(jnp.bfloat16),            # x[m, n]   (2x2-deconv residual branch)
    ], axis=-1).reshape(N * H * Wd, 5 * C)
    y = fused_matmul(a, wbig, bias, relu=True, out_dtype=jnp.bfloat16)   # (M, 4*Cout)
    # TODO(synk): the final phase interleave could be folded into a strided out index_map.
    y = y.reshape(N, H, Wd, 2, 2, Cout).transpose(0, 1, 3, 2, 4, 5)
    return y.reshape(N, 2 * H, 2 * Wd, Cout)


@jax.jit
def final_deconv_predict(x, w2, bias):
    """ConvTranspose2d(64 -> num_classes, k=2, s=2, bias=True) + softmax/argmax/threshold.
       Scores stay in sub-pixel phase layout; only the 1-channel prediction is interleaved
       (the 40-class f32 score map is never shuffled through HBM)."""
    N, H, Wd, Cin = x.shape
    C = NUM_CLASSES
    y = fused_matmul(x.reshape(N * H * Wd, Cin), w2.reshape(Cin, 4 * C),
                     jnp.tile(bias, 4), relu=False, out_dtype=jnp.float32)
    pred = predict_rows(y.reshape(N * H * Wd * 4, C))
    pred = pred.reshape(N, H, Wd, 2, 2).transpose(0, 1, 3, 2, 4)
    return pred.reshape(N, 2 * H, 2 * Wd)


@jax.jit
def max_pool_3x3_s2_p1(x):
    # TODO(synk): max-pool window reduction kept in plain JAX glue (cheap, memory-bound).
    N, H, W, C = x.shape
    xp = jnp.pad(x, ((0, 0), (1, 1), (1, 1), (0, 0)), constant_values=-jnp.inf)
    Ho = (H + 2 - 3) // 2 + 1
    Wo = (W + 2 - 3) // 2 + 1
    out = None
    for kh in range(3):
        for kw in range(3):
            s = xp[:, kh:kh + (Ho - 1) * 2 + 1:2, kw:kw + (Wo - 1) * 2 + 1:2, :]
            out = s if out is None else jnp.maximum(out, s)
    return out


# ----------------------------------------------------------------------------
# Resize helpers (glue; only used when resize=True / stabilize paths)
# ----------------------------------------------------------------------------

def bilinear_resize_align_corners(img, oh, ow):
    N, H, W, C = img.shape
    ys = jnp.zeros((oh,), jnp.float32) if oh == 1 else \
        jnp.arange(oh, dtype=jnp.float32) * (H - 1) / (oh - 1)
    xs = jnp.zeros((ow,), jnp.float32) if ow == 1 else \
        jnp.arange(ow, dtype=jnp.float32) * (W - 1) / (ow - 1)
    y0 = jnp.floor(ys).astype(jnp.int32)
    y1 = jnp.minimum(y0 + 1, H - 1)
    x0 = jnp.floor(xs).astype(jnp.int32)
    x1 = jnp.minimum(x0 + 1, W - 1)
    wy = (ys - y0.astype(jnp.float32))[None, :, None, None]
    wx = (xs - x0.astype(jnp.float32))[None, None, :, None]
    r0 = img[:, y0]
    r1 = img[:, y1]
    top = r0[:, :, x0] * (1 - wx) + r0[:, :, x1] * wx
    bot = r1[:, :, x0] * (1 - wx) + r1[:, :, x1] * wx
    return top * (1 - wy) + bot * wy


def nearest_resize(img, oh, ow):
    N, H, W, C = img.shape
    yi = (jnp.arange(oh) * H) // oh
    xi = (jnp.arange(ow) * W) // ow
    return img[:, yi][:, :, xi]


# ----------------------------------------------------------------------------
# Parameter construction (deterministic synthetic init, BN folded, bf16 weights)
# ----------------------------------------------------------------------------

class _KeyGen:
    def __init__(self, seed):
        self._key = jax.random.PRNGKey(seed)

    def __call__(self):
        self._key, sub = jax.random.split(self._key)
        return sub


_BN_SCALE = 1.0 / math.sqrt(1.0 + BN_EPS)   # fresh eval-mode BN: gamma=1, beta=0, mu=0, var=1


def _init_conv(kg, kh, kw, cin, cout):
    std = math.sqrt(1.0 / (kh * kw * cin))
    return std * jax.random.normal(kg(), (kh, kw, cin, cout), jnp.float32)


def _init_convT2(kg, cin, cout):
    std = math.sqrt(1.0 / (4 * cin))
    return std * jax.random.normal(kg(), (cin, 2, 2, cout), jnp.float32)


def _conv_bn(kg, kh, kw, cin, cout):
    """Conv weight with eval-mode BN scale folded; returns (bf16 weight, f32 bias)."""
    w = _init_conv(kg, kh, kw, cin, cout) * _BN_SCALE
    return w.astype(jnp.bfloat16), jnp.zeros((cout,), jnp.float32)


def _init_trans_s2_fused(kg, cin, cout):
    """Fused weight for ConvTranspose(k3,s2,p1,op1)+BN plus ConvTranspose(k2,s2)+BN residual.
       wc is the conv-equivalent (channel-swapped, spatially flipped) k3 kernel — valid here
       only because weights are synthetic; a real checkpoint load must apply that transform.
       Row blocks: [h(m,n); h(m,n+1); h(m+1,n); h(m+1,n+1); x];  column blocks: [ee|eo|oe|oo]."""
    wc = _init_conv(kg, 3, 3, cin, cout) * _BN_SCALE
    w2 = _init_convT2(kg, cin, cout) * _BN_SCALE
    Z = jnp.zeros((cin, cout), jnp.float32)
    col_ee = jnp.concatenate([wc[1, 1], Z, Z, Z, w2[:, 0, 0, :]], axis=0)
    col_eo = jnp.concatenate([wc[1, 0], wc[1, 2], Z, Z, w2[:, 0, 1, :]], axis=0)
    col_oe = jnp.concatenate([wc[0, 1], Z, wc[2, 1], Z, w2[:, 1, 0, :]], axis=0)
    col_oo = jnp.concatenate([wc[0, 0], wc[0, 2], wc[2, 0], wc[2, 2], w2[:, 1, 1, :]], axis=0)
    wbig = jnp.concatenate([col_ee, col_eo, col_oe, col_oo], axis=1).astype(jnp.bfloat16)
    bias = jnp.zeros((4 * cout,), jnp.float32)          # (BN2 bias + up-BN bias), both zero
    return wbig, bias


def _make_bottleneck(kg, inplanes, planes, stride, downsample):
    w1, b1 = _conv_bn(kg, 1, 1, inplanes, planes)
    w2, b2 = _conv_bn(kg, 3, 3, planes, planes)
    w3, b3 = _conv_bn(kg, 1, 1, planes, planes * 4)
    p = {"stride": stride, "w1": w1, "b1": b1, "w2": w2, "b2": b2, "w3": w3, "b3": b3}
    if downsample:
        p["wd"], p["bd"] = _conv_bn(kg, 1, 1, inplanes, planes * 4)
    return p


def _make_layer(kg, inplanes, planes, blocks, stride=1):
    ds = (stride != 1) or (inplanes != planes * 4)
    layers = [_make_bottleneck(kg, inplanes, planes, stride, ds)]
    inplanes = planes * 4
    for _ in range(1, blocks):
        layers.append(_make_bottleneck(kg, inplanes, planes, 1, False))
    return layers, inplanes


def _make_trans_block(kg, inplanes, planes, stride, up_kind):
    w1, b1 = _conv_bn(kg, 3, 3, inplanes, inplanes)
    p = {"stride": stride, "w1": w1, "b1": b1}
    if up_kind == "deconv" and stride != 1:
        p["fused_w"], p["fused_b"] = _init_trans_s2_fused(kg, inplanes, planes)
    else:
        p["w2"], p["b2"] = _conv_bn(kg, 3, 3, inplanes, planes)
        if up_kind == "conv":
            p["wu"], p["bu"] = _conv_bn(kg, 1, 1, inplanes, planes)
    return p


def _make_transpose(kg, inplanes, planes, blocks, stride=1):
    layers = []
    for _ in range(1, blocks):
        layers.append(_make_trans_block(kg, inplanes, inplanes, 1, None))
    if stride != 1:
        up = "deconv"
    elif inplanes != planes:
        up = "conv"
    else:
        up = None
    layers.append(_make_trans_block(kg, inplanes, planes, stride, up))
    return layers, planes


def init_rednet_params(seed=0):
    kg = _KeyGen(seed)
    P = {}
    P["conv1_w"], P["conv1_b"] = _conv_bn(kg, 7, 7, 3, 64)
    P["conv1d_w"], P["conv1d_b"] = _conv_bn(kg, 7, 7, 1, 64)

    inp = 64
    P["layer1"], inp = _make_layer(kg, inp, 64, 3)
    P["layer2"], inp = _make_layer(kg, inp, 128, 4, 2)
    P["layer3"], inp = _make_layer(kg, inp, 256, 6, 2)
    P["layer4"], inp = _make_layer(kg, inp, 512, 3, 2)

    inp = 64
    P["layer1_d"], inp = _make_layer(kg, inp, 64, 3)
    P["layer2_d"], inp = _make_layer(kg, inp, 128, 4, 2)
    P["layer3_d"], inp = _make_layer(kg, inp, 256, 6, 2)
    P["layer4_d"], inp = _make_layer(kg, inp, 512, 3, 2)

    inp = 512
    P["deconv1"], inp = _make_transpose(kg, inp, 256, 6, 2)
    P["deconv2"], inp = _make_transpose(kg, inp, 128, 4, 2)
    P["deconv3"], inp = _make_transpose(kg, inp, 64, 3, 2)
    P["deconv4"], inp = _make_transpose(kg, inp, 64, 3, 2)

    for name, (ci, co) in {"agant0": (64, 64), "agant1": (256, 64),
                           "agant2": (512, 128), "agant3": (1024, 256),
                           "agant4": (2048, 512)}.items():
        w, b = _conv_bn(kg, 1, 1, ci, co)
        P[name] = {"w": w, "b": b}

    inp = 64
    P["final_conv"], inp = _make_transpose(kg, inp, 64, 3, 1)
    # Final ConvTranspose2d(k=2, s=2, bias=True), no BN.
    # TODO(synk): on v7x these weights could be stored fp8 to halve the W stream.
    P["final_w"] = _init_convT2(kg, inp, NUM_CLASSES).astype(jnp.bfloat16)
    P["final_b"] = jnp.zeros((NUM_CLASSES,), jnp.float32)
    return P


# ----------------------------------------------------------------------------
# Forward pass
# ----------------------------------------------------------------------------

def _bottleneck_forward(x, p):
    out = conv_bn_act(x, p["w1"], p["b1"], stride=1, pad=0, relu=True)
    out = conv_bn_act(out, p["w2"], p["b2"], stride=p["stride"], pad=1, relu=True)
    if "wd" in p:
        residual = conv_bn_act(x, p["wd"], p["bd"], stride=p["stride"], pad=0, relu=False)
    else:
        residual = x
    # residual add + final ReLU fused into the conv3 matmul epilogue
    return conv_bn_act(out, p["w3"], p["b3"], residual,
                       stride=1, pad=0, relu=True, res_mode="pre")


def _trans_block_forward(x, p):
    out = conv_bn_act(x, p["w1"], p["b1"], stride=1, pad=1, relu=True)
    if "fused_w" in p:
        # stride-2 block: ConvT(k3,s2)+BN, ConvT(k2,s2)+BN residual, add and ReLU all fused
        return transposed_s2_block(out, x, p["fused_w"], p["fused_b"])
    if "wu" in p:
        residual = conv_bn_act(x, p["wu"], p["bu"], stride=1, pad=0, relu=False)
    else:
        residual = x
    return conv_bn_act(out, p["w2"], p["b2"], residual,
                       stride=p["stride"], pad=1, relu=True, res_mode="pre")


def _run_blocks(x, blocks, fn):
    for b in blocks:
        x = fn(x, b)
    return x


def _agant(x, p, skip=None):
    """agant(x) = relu(bn(conv1x1(x)));  with skip: returns skip + agant(x) (fused)."""
    res_mode = "post" if skip is not None else None
    return conv_bn_act(x, p["w"], p["b"], skip, stride=1, pad=0, relu=True,
                       res_mode=res_mode)


def rednet_predict(P, rgb, depth):
    """Full RedNet forward + softmax/argmax prediction.  Returns (B, H, W) float preds."""
    # --- encoder (dual branch) ---
    x = conv_bn_act(rgb, P["conv1_w"], P["conv1_b"], stride=2, pad=3, relu=True)
    d = conv_bn_act(depth, P["conv1d_w"], P["conv1d_b"], stride=2, pad=3, relu=True)
    fuse0 = add_act(x, d, relu=False)
    x = max_pool_3x3_s2_p1(fuse0)
    d = max_pool_3x3_s2_p1(d)

    x = _run_blocks(x, P["layer1"], _bottleneck_forward)
    d = _run_blocks(d, P["layer1_d"], _bottleneck_forward)
    fuse1 = add_act(x, d, relu=False)
    x = _run_blocks(fuse1, P["layer2"], _bottleneck_forward)
    d = _run_blocks(d, P["layer2_d"], _bottleneck_forward)
    fuse2 = add_act(x, d, relu=False)
    x = _run_blocks(fuse2, P["layer3"], _bottleneck_forward)
    d = _run_blocks(d, P["layer3_d"], _bottleneck_forward)
    fuse3 = add_act(x, d, relu=False)
    x = _run_blocks(fuse3, P["layer4"], _bottleneck_forward)
    d = _run_blocks(d, P["layer4_d"], _bottleneck_forward)
    fuse4 = add_act(x, d, relu=False)
    agant4 = _agant(fuse4, P["agant4"])

    # --- decoder (skip adds fused into the agant matmul epilogues) ---
    x = _run_blocks(agant4, P["deconv1"], _trans_block_forward)
    x = _agant(fuse3, P["agant3"], skip=x)            # x + agant3(fuse3)
    x = _run_blocks(x, P["deconv2"], _trans_block_forward)
    x = _agant(fuse2, P["agant2"], skip=x)            # x + agant2(fuse2)
    x = _run_blocks(x, P["deconv3"], _trans_block_forward)
    x = _agant(fuse1, P["agant1"], skip=x)            # x + agant1(fuse1)
    x = _run_blocks(x, P["deconv4"], _trans_block_forward)
    x = _agant(fuse0, P["agant0"], skip=x)            # x + agant0(fuse0)
    x = _run_blocks(x, P["final_conv"], _trans_block_forward)

    # final ConvTranspose(k2,s2) + softmax/argmax, scores kept in phase layout
    return final_deconv_predict(x, P["final_w"], P["final_b"])


def rednet_resize_wrapper_forward(P, rgb, depth, *, resize=False, stabilize=False,
                                  pretrained_size=(480, 640)):
    """rgb: (B,H,W,3) in [0,255]; depth: (B,H,W,1).  Returns (B,H,W) float predictions."""
    B, og_h, og_w, _ = rgb.shape
    rgb = rgb.astype(jnp.float32) / 255.0
    depth = depth.astype(jnp.float32)
    if resize:
        rgb = bilinear_resize_align_corners(rgb, *pretrained_size)
        depth = nearest_resize(depth, *pretrained_size)
    rgb = (rgb - RGB_MEAN) / RGB_STD
    depth_clip = (depth < 1.0)[..., 0]
    depth = (depth - DEPTH_MEAN) / DEPTH_STD

    pred = rednet_predict(P, rgb, depth)
    if stabilize:
        pred = jnp.where(depth_clip, pred, -1.0)
    if resize:
        pred = nearest_resize(pred[..., None], og_h, og_w)[..., 0]
    return pred


# ----------------------------------------------------------------------------
# Demo
# ----------------------------------------------------------------------------

if __name__ == "__main__":
    # Small input (must be a multiple of 32 for encoder/decoder alignment);
    # wrapper instantiated with resize=False, stabilize=False.
    B, H, W = 2, 64, 64
    key = jax.random.PRNGKey(0)
    k_rgb, k_depth = jax.random.split(key)
    rgb = jax.random.uniform(k_rgb, (B, H, W, 3), jnp.float32, 0.0, 255.0)
    depth = jax.random.uniform(k_depth, (B, H, W, 1), jnp.float32, 0.0, 1.5)

    params = init_rednet_params(seed=0)
    pred = rednet_resize_wrapper_forward(params, rgb, depth, resize=False, stabilize=False)
    pred = jax.block_until_ready(pred)
    assert pred.shape == (B, H, W), pred.shape
    print("KERNEL_OK")
</pallas_src>

<mosaic_0001>
module attributes {stable_mosaic.version = 11 : i64} {
  func.func @_mm_kernel(%arg0: i32, %arg1: i32, %arg2: memref<1024x147xbf16, #tpu.memory_space<vmem>>, %arg3: memref<147x64xbf16, #tpu.memory_space<vmem>>, %arg4: memref<1x64xf32, #tpu.memory_space<vmem>>, %arg5: memref<1024x64xbf16, #tpu.memory_space<vmem>>) attributes {dimension_semantics = [#tpu.dimension_semantics<parallel>, #tpu.dimension_semantics<parallel>], iteration_bounds = array<i64: 2, 1>, scalar_prefetch = 0 : i64, scratch_operands = 0 : i64, tpu.core_type = #tpu.core_type<tc>, window_params = [{transform_indices = @transform_0, window_bounds = array<i64: 1024, 147>}, {transform_indices = @transform_1, window_bounds = array<i64: 147, 64>}, {transform_indices = @transform_2, window_bounds = array<i64: 1, 64>}, {transform_indices = @transform_3, window_bounds = array<i64: 1024, 64>}]} {
    %c0 = arith.constant 0 : index
    %c0_0 = arith.constant 0 : index
    %0 = vector.load %arg2[%c0, %c0_0] : memref<1024x147xbf16, #tpu.memory_space<vmem>>, vector<1024x147xbf16>
    %c0_1 = arith.constant 0 : index
    %c0_2 = arith.constant 0 : index
    %1 = vector.load %arg3[%c0_1, %c0_2] : memref<147x64xbf16, #tpu.memory_space<vmem>>, vector<147x64xbf16>
    %cst = arith.constant dense<0.000000e+00> : vector<1024x64xf32>
    %2 = tpu.matmul %0, %1, %cst {dimension_numbers = #tpu.dot_dimension_numbers<[1], [0], [0], [1], [0, 0, 1, 1], [], []>} : vector<1024x147xbf16>, vector<147x64xbf16>, vector<1024x64xf32> -> vector<1024x64xf32>
    %c0_3 = arith.constant 0 : index
    %c0_4 = arith.constant 0 : index
    %3 = vector.load %arg4[%c0_3, %c0_4] : memref<1x64xf32, #tpu.memory_space<vmem>>, vector<1x64xf32>
    %4 = vector.broadcast %3 : vector<1x64xf32> to vector<1024x64xf32>
    %5 = arith.addf %2, %4 : vector<1024x64xf32>
    %cst_5 = arith.constant 0.000000e+00 : f32
    %6 = vector.broadcast %cst_5 : f32 to vector<1024x64xf32>
    %7 = arith.maximumf %5, %6 : vector<1024x64xf32>
    %8 = arith.truncf %7 : vector<1024x64xf32> to vector<1024x64xbf16>
    %c0_6 = arith.constant 0 : index
    %c0_7 = arith.constant 0 : index
    %9 = vector.load %arg5[%c0_6, %c0_7] : memref<1024x64xbf16, #tpu.memory_space<vmem>>, vector<1024x64xbf16>
    tpu.vector_store %arg5[%c0_6, %c0_7], %8 {strides = array<i32>} : memref<1024x64xbf16, #tpu.memory_space<vmem>>, vector<1024x64xbf16>,
    return
  }
  func.func @transform_0(%arg0: i32, %arg1: i32) -> (i32, i32) {
    %c0_i32 = arith.constant 0 : i32
    %c0_i32_0 = arith.constant 0 : i32
    return %arg0, %c0_i32 : i32, i32
  }
  func.func @transform_1(%arg0: i32, %arg1: i32) -> (i32, i32) {
    %c0_i32 = arith.constant 0 : i32
    %c0_i32_0 = arith.constant 0 : i32
    return %c0_i32, %arg1 : i32, i32
  }
  func.func @transform_2(%arg0: i32, %arg1: i32) -> (i32, i32) {
    %c0_i32 = arith.constant 0 : i32
    %c0_i32_0 = arith.constant 0 : i32
    return %c0_i32, %arg1 : i32, i32
  }
  func.func @transform_3(%arg0: i32, %arg1: i32) -> (i32, i32) {
    %c0_i32 = arith.constant 0 : i32
    return %arg0, %arg1 : i32, i32
  }
}

</mosaic_0001>

<bundles_post_ra>
// kernel: conv_bn_act.1
= control target key start
LH: loop header
LB: loop body
LE: loop exit
PB: predicated region body
PF: predicated region fallthrough
CT: control target
= control target key end

     0   :  { %8 = vsyncpa [#allocation3], 0  ;;  %s4239_s0 = inlined_call_operand.vmem [shape: bf16[2048,147], index: 0, kind: input, shape index: {}]   ;;  %s4240_s1 = inlined_call_operand.vmem [shape: bf16[147,64], index: 1, kind: input, shape index: {}]   ;;  %s4241_s2 = inlined_call_operand.vmem [shape: f32[1,64], index: 2, kind: input, shape index: {}]   ;;  %s4242_s3 = inlined_call_operand.hbm [shape: bf16[2048,64], index: 3, kind: output, shape index: {}]  }
   0x1   :  { %10 = vsyncpa [#allocation3 + $0x1], 0  ;;  %s3500_s12 = smov 0   ;;  %s3502_s13 = smov 0  }
   0x2   :  { %s3504_s14 = smov 0   ;;  %s3506_s15 = smov 0  }
   0x3   :  { %s3508_s16 = smov 0   ;;  %s3510_s17 = smov 0  }
   0x4 LB: > { %s2636_s18 = sadd.s32 4294967295, %s3473_s17   ;;  %s2637_s19 = sadd.s32 4294967294, %s3473_s17   ;;  %s3473_s17 = sphi %s3510_s17, %s16_s17   ;;  %s3469_s16 = sphi %s3508_s16, %s4249_s16   ;;  %s3465_s15 = sphi %s3506_s15, %s4248_s15   ;;  %s3461_s14 = sphi %s3504_s14, %s4247_s14   ;;  %s3457_s13 = sphi %s3502_s13, %s4246_s13   ;;  %s3453_s12 = sphi %s3500_s12, %s4245_s12  }
   0x5   : > { %s28_s20 = sadd.s32 1, %s3469_s16  ;;  %s115_s21 = sadd.s32 1, %s3461_s14 }
   0x6   : > { %p30_p0 = scmp.ge.s32.totalorder %s28_s20, 2  ;;  %p125_p1 = scmp.ne.s32.totalorder %s3461_s14, %s3457_s13 }
   0x7   : > { %p126_p2 = scmp.eq.s32.totalorder %s2636_s18, 1  ;;  %p131_p3 = scmp.ne.s32.totalorder %s3457_s13, %s3453_s12 }
   0x8   : > { %s4251_s20 = smov (%p30_p0, %s28_s20), 0  ;;  %p132_p5 = scmp.eq.s32.totalorder %s2637_s19, 1 }
   0x9   : > { %p3540_p4 = por %p126_p2, %p125_p1  ;;  %s110_s23 = ssub.s32 %s3469_s16, %s4251_s20 }
   0xa   : > { %p2642_p6 = scmp.ge.s32.totalorder %s3473_s17, 1  ;;  %p113_p7 = scmp.eq.s32.totalorder %s110_s23, 0 }
   0xb   : > { %p3547_p8 = por %p132_p5, %p131_p3  ;;  %p173_p9 = scmp.lt.s32.totalorder %s3473_s17, 3 }
   0xc   : > { %s3553_s25 = scalar_select %p113_p7, %s3461_s14, %s115_s21  }
   0xd   : > { %p174_p10 = pnand %p2642_p6, %p173_p9 }
   0xe   : > { %v3192_v0 = vld [vmem:[%s4240_s1] sm:$0xff] (!%p174_p10)   ;;  %v3475_v1 = vmov (!%p174_p10), 0   ;;  %v3193_v2 = vld [vmem:[%s4240_s1 + $0x8] sm:$0xff] (!%p174_p10)   ;;  %v3194_v3 = vld [vmem:[%s4240_s1 + $0x10] sm:$0xff] (!%p174_p10)   ;;  %s2644_s5 = sshll.u32 (!%p174_p10), %s3465_s15, 7  ;;  %vm1008_vm0 = vcmask (!%p174_p10), 154624  }
   0xf   : > { %177 = sbr.rel (%p174_p10) target bundleno = 538 (0x21a), region = 32  ;;  %1208 = vmatprep.subr.bf16.mxu0 (!%p174_p10), %v3475_v1  ;;  %3113 = vmatprep.subr.bf16.mxu1 (!%p174_p10), %v3475_v1  ;;  %p206_p11 = scmp.lt.s32.totalorder (!%p174_p10), %s2644_s5, 255  ;;  %v3195_v4 = vld [vmem:[%s4240_s1 + $0x18] sm:$0xff] (!%p174_p10)   ;;  %v3196_v5 = vld [vmem:[%s4240_s1 + $0x20] sm:$0xff] (!%p174_p10)   ;;  %v3197_v8 = vld [vmem:[%s4240_s1 + $0x28] sm:$0xff] (!%p174_p10)   ;;  %vm1201_vm1 = vcmask (!%p174_p10), 1040384  }
  0x10   : > { %1209 = vmatpush1.bf16.msra.mxu0 (!%p174_p10), %v3192_v0  ;;  %3123 = vmatpush1.bf16.msra.mxu1 (!%p174_p10), %v3192_v0  ;;  %v3198_v9 = vld [vmem:[%s4240_s1 + $0x30] sm:$0xff] (!%p174_p10)   ;;  %v3199_v10 = vld [vmem:[%s4240_s1 + $0x38] sm:$0xff] (!%p174_p10)   ;;  %vm1202_vm2 = vcmask (!%p174_p10), 1041408   ;;  %v3476_v11 = vmov (!%p174_p10), 65535   ;;  %v3200_v13 = vld [vmem:[%s4240_s1 + $0x40] sm:$0xff] (!%p174_p10)   ;;  %s202_s7 = sand.u32 (!%p174_p10), 1, %s3457_s13  }
  0x11   : > { %1210 = vmatprep.subr.bf16.mxu0 (!%p174_p10), %v3475_v1  ;;  %3114 = vmatprep.subr.bf16.mxu1 (!%p174_p10), %v3475_v1  ;;  %v1203_v12 = vsel (!%p174_p10), %vm1201_vm1, 4294967295, %v3476_v11  ;;  %v3201_v14 = vld [vmem:[%s4240_s1 + $0x48] ss:$0 sps:$4 sm:$0x33] (!%p174_p10)   ;;  %s2643_s10 = sshll.u32 (!%p174_p10), %s202_s7, 9  ;;  %vm2393_vm3 = vcmask (!%p174_p10), 519168  }
  0x12   : > { %v1204_v15 = vsel (!%p174_p10), %vm1202_vm2, %v1203_v12, 0  ;;  %s3775_s18 = scalar_lea.vmem (!%p174_p10), [#allocation2], %s2643_s10  ;;  %s3112_s21 = sshll.u32 (!%p174_p10), %s3465_s15, 13 }
  0x13   : > { %v1206_v16 = vand.u32 (!%p174_p10), %v3201_v14, %v1204_v15  ;;  %s2537_s23 = sshll.u32 (!%p174_p10), %s3775_s18, 4  ;;  %s4179_s28 = scalar_lea.hbm (!%p174_p10), %s4242_s3, %s3112_s21  ;;  %s4181_s23 = int_to_ptr.vmem [resolvable:$true] %s2537_s23 }
  0x14   : > { %1211 = vmatpush1.bf16.msra.mxu0 (!%p174_p10), %v3193_v2  ;;  %3124 = vmatpush1.bf16.msra.mxu1 (!%p174_p10), %v3193_v2  ;;  %s4193_s15 = scalar_lea.sflag (!%p174_p10), [#allocation3], %s202_s7  ;;  %s3395_s29 = scalar_lea.vmem (!%p174_p10), %s4181_s23, 8192 }
  0x15   : > { %1212 = vmatprep.subr.bf16.mxu0 (!%p174_p10), %v3475_v1  ;;  %3115 = vmatprep.subr.bf16.mxu1 (!%p174_p10), %v3475_v1  ;;  %p3396_p12 = scmp.ne.s32.totalorder (!%p174_p10), %s4181_s23, %s3395_s29  ;;  %s3477_s30 = smov (!%p174_p10), [#allocation2]  }
  0x16   : > { %s4253_s5 = smov (!%p206_p11, %s2644_s5), 255  ;;  %s3399_s4 = sshll.u32 %s3477_s30, 4  ;;  %s3400_s4 = int_to_ptr.vmem [resolvable:$false] %s3399_s4 }
  0x17   : > { %s2983_s8 = sshll.u32 %s4253_s5, 3  ;;  %p3397_p13 = pnand %p3396_p12, %p3540_p4 }
  0x18   : > { %1213 = vmatpush1.bf16.msra.mxu0 %v3194_v3  ;;  %3125 = vmatpush1.bf16.msra.mxu1 %v3194_v3  ;;  %s3571_s11 = scalar_lea.vmem %s4239_s0, %s2983_s8  ;;  %s3401_s5 = scalar_lea.vmem %s3400_s4, 16384 }
  0x19   : > { %1214 = vmatprep.subr.bf16.mxu0 %v3475_v1  ;;  %3116 = vmatprep.subr.bf16.mxu1 %v3475_v1  ;;  %v3204_v6 = vld [vmem:[%s3571_s11 + $0x4] ss:$8 sps:$4 sm:$0xff]   ;;  %v3202_v17 = vld [vmem:[%s3571_s11] ss:$8 sps:$4 sm:$0xff]   ;;  %v3208_v19 = vld [vmem:[%s3571_s11 + $0x14] ss:$8 sps:$4 sm:$0xff]   ;;  %p3398_p0 = pneg %p3397_p13  ;;  %p3402_p1 = scmp.lt.s32.totalorder %s4181_s23, %s3400_s4 }
  0x1a   : > { %v3207_v7 = vld [vmem:[%s3571_s11 + $0x204] ss:$8 sps:$4 sm:$0xff]   ;;  %2786 = vmatprep.mubr.msk.bf16.mxu0 %vm1008_vm0, %v3204_v6  ;;  %v3205_v18 = vld [vmem:[%s3571_s11 + $0x200] ss:$8 sps:$4 sm:$0xff]   ;;  %v3210_v20 = vld [vmem:[%s3571_s11 + $0x214] ss:$8 sps:$4 sm:$0xff]   ;;  %p3403_p2 = scmp.lt.s32.totalorder %s3401_s5, %s3395_s29 }
  0x1b   : > { %2818 = vmatprep.mubr.msk.bf16.mxu1 %vm1008_vm0, %v3207_v7  ;;  %v3212_v21 = vld [vmem:[%s3571_s11 + $0x10] ss:$8 sps:$4 sm:$0xff]   ;;  %v3214_v23 = vld [vmem:[%s3571_s11 + $0x24] ss:$8 sps:$4 sm:$0xff]   ;;  %v3218_v25 = vld [vmem:[%s3571_s11 + $0x20] ss:$8 sps:$4 sm:$0xff]  }
  0x1c   : > { %1215 = vmatpush1.bf16.msra.mxu0 %v3195_v4  ;;  %3126 = vmatpush1.bf16.msra.mxu1 %v3195_v4  ;;  %v3213_v22 = vld [vmem:[%s3571_s11 + $0x210] ss:$8 sps:$4 sm:$0xff]   ;;  %v3216_v24 = vld [vmem:[%s3571_s11 + $0x224] ss:$8 sps:$4 sm:$0xff]   ;;  %v3219_v26 = vld [vmem:[%s3571_s11 + $0x220] ss:$8 sps:$4 sm:$0xff]   ;;  %p3404_p3 = por %p3403_p2, %p3402_p1 }
  0x1d   : > { %1216 = vmatprep.subr.bf16.mxu0 %v3475_v1  ;;  %3117 = vmatprep.subr.bf16.mxu1 %v3475_v1  ;;  %v3220_v27 = vld [vmem:[%s3571_s11 + $0x34] ss:$8 sps:$4 sm:$0xff]   ;;  %v3224_v29 = vld [vmem:[%s3571_s11 + $0x30] ss:$8 sps:$4 sm:$0xff]   ;;  %v3226_v31 = vld [vmem:[%s3571_s11 + $0x44] ss:$8 sps:$4 sm:$0xff]  }
  0x1e   : > { %v3222_v28 = vld [vmem:[%s3571_s11 + $0x234] ss:$8 sps:$4 sm:$0xff]   ;;  %v3225_v30 = vld [vmem:[%s3571_s11 + $0x230] ss:$8 sps:$4 sm:$0xff]   ;;  %v3228_v32 = vld [vmem:[%s3571_s11 + $0x244] ss:$8 sps:$4 sm:$0xff]   ;;  %p3405_p5 = pnand %p3404_p3, %p3398_p0 }
  0x1f   : > { %v3230_v33 = vld [vmem:[%s3571_s11 + $0x40] ss:$8 sps:$4 sm:$0xff]   ;;  %v3232_v35 = vld [vmem:[%s3571_s11 + $0x54] ss:$8 sps:$4 sm:$0xff]   ;;  %v3236_v37 = vld [vmem:[%s3571_s11 + $0x50] ss:$8 sps:$4 sm:$0xff]  }
  0x20   : > { %1217 = vmatpush1.bf16.msra.mxu0 %v3196_v5  ;;  %3127 = vmatpush1.bf16.msra.mxu1 %v3196_v5  ;;  %v3231_v34 = vld [vmem:[%s3571_s11 + $0x240] ss:$8 sps:$4 sm:$0xff]   ;;  %v3234_v36 = vld [vmem:[%s3571_s11 + $0x254] ss:$8 sps:$4 sm:$0xff]   ;;  %v3237_v38 = vld [vmem:[%s3571_s11 + $0x250] ss:$8 sps:$4 sm:$0xff]  }
  0x21   : > { %1218 = vmatprep.subr.bf16.mxu0 %v3475_v1  ;;  %3118 = vmatprep.subr.bf16.mxu1 %v3475_v1  ;;  %v3238_v39 = vld [vmem:[%s3571_s11 + $0x64] ss:$8 sps:$4 sm:$0xff]   ;;  %v3242_v41 = vld [vmem:[%s3571_s11 + $0x60] ss:$8 sps:$4 sm:$0xff]   ;;  %v3244_v43 = vld [vmem:[%s3571_s11 + $0x74] ss:$8 sps:$4 sm:$0xff]  }
  0x22   : > { %v3240_v40 = vld [vmem:[%s3571_s11 + $0x264] ss:$8 sps:$4 sm:$0xff]   ;;  %v3243_v42 = vld [vmem:[%s3571_s11 + $0x260] ss:$8 sps:$4 sm:$0xff]   ;;  %v3246_v44 = vld [vmem:[%s3571_s11 + $0x274] ss:$8 sps:$4 sm:$0xff]  }
  0x23   : > { %v3248_v45 = vld [vmem:[%s3571_s11 + $0x70] ss:$8 sps:$4 sm:$0xff]   ;;  %v3250_v47 = vld [vmem:[%s3571_s11 + $0x84] ss:$8 sps:$4 sm:$0xff]   ;;  %v3254_v49 = vld [vmem:[%s3571_s11 + $0x80] ss:$8 sps:$4 sm:$0xff]  }
  0x24   : > { %1219 = vmatpush1.bf16.msra.mxu0 %v3197_v8  ;;  %3128 = vmatpush1.bf16.msra.mxu1 %v3197_v8  ;;  %v3249_v46 = vld [vmem:[%s3571_s11 + $0x270] ss:$8 sps:$4 sm:$0xff]   ;;  %v3252_v48 = vld [vmem:[%s3571_s11 + $0x284] ss:$8 sps:$4 sm:$0xff]   ;;  %v3255_v50 = vld [vmem:[%s3571_s11 + $0x280] ss:$8 sps:$4 sm:$0xff]  }
  0x25   : > { %1220 = vmatprep.subr.bf16.mxu0 %v3475_v1  ;;  %3119 = vmatprep.subr.bf16.mxu1 %v3475_v1  ;;  %v3256_v51 = vld [vmem:[%s3571_s11 + $0x94] ss:$8 sps:$4 sm:$0xff]   ;;  %v3260_v53 = vld [vmem:[%s3571_s11 + $0x90] ss:$8 sps:$4 sm:$0xff]   ;;  %v3262_v55 = vld [vmem:[%s3571_s11 + $0xa4] ss:$8 sps:$4 sm:$0xff]  }
  0x26   : > { %v3258_v52 = vld [vmem:[%s3571_s11 + $0x294] ss:$8 sps:$4 sm:$0xff]   ;;  %v3261_v54 = vld [vmem:[%s3571_s11 + $0x290] ss:$8 sps:$4 sm:$0xff]   ;;  %v3264_v56 = vld [vmem:[%s3571_s11 + $0x2a4] ss:$8 sps:$4 sm:$0xff]  }
  0x27   : > { %v3266_v57 = vld [vmem:[%s3571_s11 + $0xa0] ss:$8 sps:$4 sm:$0xff]   ;;  %v3268_v59 = vld [vmem:[%s3571_s11 + $0xb4] ss:$8 sps:$4 sm:$0xff]   ;;  %v3272_v61 = vld [vmem:[%s3571_s11 + $0xb0] ss:$8 sps:$4 sm:$0xff]  }
  0x28   : > { %1221 = vmatpush1.bf16.msra.mxu0 %v3198_v9  ;;  %3129 = vmatpush1.bf16.msra.mxu1 %v3198_v9  ;;  %v3267_v58 = vld [vmem:[%s3571_s11 + $0x2a0] ss:$8 sps:$4 sm:$0xff]   ;;  %v3270_v60 = vld [vmem:[%s3571_s11 + $0x2b4] ss:$8 sps:$4 sm:$0xff]   ;;  %v3273_v62 = vld [vmem:[%s3571_s11 + $0x2b0] ss:$8 sps:$4 sm:$0xff]  }
  0x29   : > { %1222 = vmatprep.subr.bf16.mxu0 %v3475_v1  ;;  %3120 = vmatprep.subr.bf16.mxu1 %v3475_v1  ;;  %v3274_v63 = vld [vmem:[%s3571_s11 + $0xc4] ss:$8 sps:$4 sm:$0xff]   ;;  %v3279_v2 = vld [vmem:[%s3571_s11 + $0x2c0] ss:$8 sps:$4 sm:$0xff]   ;;  %v3280_v3 = vld [vmem:[%s3571_s11 + $0xd4] ss:$8 sps:$4 sm:$0xff]  }
  0x2a   : > { %v3276_v0 = vld [vmem:[%s3571_s11 + $0x2c4] ss:$8 sps:$4 sm:$0xff]   ;;  %v3282_v4 = vld [vmem:[%s3571_s11 + $0x2d4] ss:$8 sps:$4 sm:$0xff]   ;;  %v3284_v5 = vld [vmem:[%s3571_s11 + $0xd0] ss:$8 sps:$4 sm:$0xff]  }
  0x2b   : > { %v3285_v6 = vld [vmem:[%s3571_s11 + $0x2d0] ss:$8 sps:$4 sm:$0xff]   ;;  %v3286_v7 = vld [vmem:[%s3571_s11 + $0xe4] ss:$8 sps:$4 sm:$0xff]   ;;  %v3290_v9 = vld [vmem:[%s3571_s11 + $0xe0] ss:$8 sps:$4 sm:$0xff]  }
  0x2c   : > { %1223 = vmatpush1.bf16.msra.mxu0 %v3199_v10  ;;  %3130 = vmatpush1.bf16.msra.mxu1 %v3199_v10  ;;  %v3288_v8 = vld [vmem:[%s3571_s11 + $0x2e4] ss:$8 sps:$4 sm:$0xff]   ;;  %v3291_v10 = vld [vmem:[%s3571_s11 + $0x2e0] ss:$8 sps:$4 sm:$0xff]   ;;  %v3292_v11 = vld [vmem:[%s3571_s11 + $0xf4] ss:$8 sps:$4 sm:$0xff]  }
  0x2d   : > { %1224 = vmatprep.subr.bf16.mxu0 %v3475_v1  ;;  %3121 = vmatprep.subr.bf16.mxu1 %v3475_v1  ;;  %v3294_v12 = vld [vmem:[%s3571_s11 + $0x2f4] ss:$8 sps:$4 sm:$0xff]   ;;  %v3297_v14 = vld [vmem:[%s3571_s11 + $0x2f0] ss:$8 sps:$4 sm:$0xff]   ;;  %v3298_v15 = vld [vmem:[%s3571_s11 + $0x104] ss:$8 sps:$4 sm:$0xff]  }
  0x30   : > { %1225 = vmatpush1.bf16.msra.mxu0 %v3200_v13  ;;  %3131 = vmatpush1.bf16.msra.mxu1 %v3200_v13  ;;  %v3296_v13 = vld [vmem:[%s3571_s11 + $0xf0] ss:$8 sps:$4 sm:$0xff]  }
  0x31   : > { %1226 = vmatprep.subr.bf16.mxu0 %v3475_v1  ;;  %3122 = vmatprep.subr.bf16.mxu1 %v3475_v1  ;;  %v3278_v1 = vld [vmem:[%s3571_s11 + $0xc0] ss:$8 sps:$4 sm:$0xff]  }
  0x34   : > { %1227 = vmatpush1.bf16.msra.mxu0 %v1206_v16  ;;  %3132 = vmatpush1.bf16.msra.mxu1 %v1206_v16  ;;  %v3300_v16 = vld [vmem:[%s3571_s11 + $0x304] ss:$8 sps:$4 sm:$0xff]  }
  0x37   : > { %1241 = vmatmul.mubr.bf16.vlgmr.msra.gmra.mrb[0].mxu0 %v3202_v17  ;;  %1497 = vmatmul.mubr.bf16.vlgmr.msra.gmra.mrb[0].mxu1 %v3205_v18  ;;  %v3302_v17 = vld [vmem:[%s3571_s11 + $0x100] ss:$8 sps:$4 sm:$0xff]  }
  0x38   : > { %2787 = vmatprep.mubr.msk.bf16.mxu0 %vm1008_vm0, %v3208_v19  ;;  %2819 = vmatprep.mubr.msk.bf16.mxu1 %vm1008_vm0, %v3210_v20  ;;  %v3303_v18 = vld [vmem:[%s3571_s11 + $0x300] ss:$8 sps:$4 sm:$0xff]   ;;  %v3304_v19 = vld [vmem:[%s3571_s11 + $0x114] ss:$8 sps:$4 sm:$0xff]  }
  0x39   : > { %v3306_v20 = vld [vmem:[%s3571_s11 + $0x314] ss:$8 sps:$4 sm:$0xff]  }
  0x3f   : > { %1249 = vmatmul.mubr.bf16.gmra.mrb[4].mxu0 %v3212_v21  ;;  %1505 = vmatmul.mubr.bf16.gmra.mrb[4].mxu1 %v3213_v22  ;;  %v3308_v21 = vld [vmem:[%s3571_s11 + $0x110] ss:$8 sps:$4 sm:$0xff]  }
  0x40   : > { %2788 = vmatprep.mubr.msk.bf16.mxu0 %vm1008_vm0, %v3214_v23  ;;  %2820 = vmatprep.mubr.msk.bf16.mxu1 %vm1008_vm0, %v3216_v24  ;;  %v3309_v22 = vld [vmem:[%s3571_s11 + $0x310] ss:$8 sps:$4 sm:$0xff]   ;;  %v3310_v23 = vld [vmem:[%s3571_s11 + $0x124] ss:$8 sps:$4 sm:$0xff]  }
  0x41   : > { %v3312_v24 = vld [vmem:[%s3571_s11 + $0x324] ss:$8 sps:$4 sm:$0xff]  }
  0x47   : > { %1257 = vmatmul.mubr.bf16.gmra.mrb[8].mxu0 %v3218_v25  ;;  %1513 = vmatmul.mubr.bf16.gmra.mrb[8].mxu1 %v3219_v26  ;;  %v3314_v25 = vld [vmem:[%s3571_s11 + $0x120] ss:$8 sps:$4 sm:$0xff]  }
  0x48   : > { %2789 = vmatprep.mubr.msk.bf16.mxu0 %vm1008_vm0, %v3220_v27  ;;  %2821 = vmatprep.mubr.msk.bf16.mxu1 %vm1008_vm0, %v3222_v28  ;;  %v3315_v26 = vld [vmem:[%s3571_s11 + $0x320] ss:$8 sps:$4 sm:$0xff]   ;;  %v3316_v27 = vld [vmem:[%s3571_s11 + $0x134] ss:$8 sps:$4 sm:$0xff]  }
  0x49   : > { %v3318_v28 = vld [vmem:[%s3571_s11 + $0x334] ss:$8 sps:$4 sm:$0xff]  }
  0x4f   : > { %1265 = vmatmul.mubr.bf16.gmra.mrb[12].mxu0 %v3224_v29  ;;  %1521 = vmatmul.mubr.bf16.gmra.mrb[12].mxu1 %v3225_v30  ;;  %v3320_v29 = vld [vmem:[%s3571_s11 + $0x130] ss:$8 sps:$4 sm:$0xff]  }
  0x50   : > { %2790 = vmatprep.mubr.msk.bf16.mxu0 %vm1008_vm0, %v3226_v31  ;;  %2822 = vmatprep.mubr.msk.bf16.mxu1 %vm1008_vm0, %v3228_v32  ;;  %v3321_v30 = vld [vmem:[%s3571_s11 + $0x330] ss:$8 sps:$4 sm:$0xff]   ;;  %v3322_v31 = vld [vmem:[%s3571_s11 + $0x144] ss:$8 sps:$4 sm:$0xff]  }
  0x51   : > { %v3324_v32 = vld [vmem:[%s3571_s11 + $0x344] ss:$8 sps:$4 sm:$0xff]  }
  0x57   : > { %1273 = vmatmul.mubr.bf16.gmra.mrb[16].mxu0 %v3230_v33  ;;  %1529 = vmatmul.mubr.bf16.gmra.mrb[16].mxu1 %v3231_v34  ;;  %v3326_v33 = vld [vmem:[%s3571_s11 + $0x140] ss:$8 sps:$4 sm:$0xff]  }
  0x58   : > { %2791 = vmatprep.mubr.msk.bf16.mxu0 %vm1008_vm0, %v3232_v35  ;;  %2823 = vmatprep.mubr.msk.bf16.mxu1 %vm1008_vm0, %v3234_v36  ;;  %v3327_v34 = vld [vmem:[%s3571_s11 + $0x340] ss:$8 sps:$4 sm:$0xff]   ;;  %v3328_v35 = vld [vmem:[%s3571_s11 + $0x154] ss:$8 sps:$4 sm:$0xff]  }
  0x59   : > { %v3330_v36 = vld [vmem:[%s3571_s11 + $0x354] ss:$8 sps:$4 sm:$0xff]  }
  0x5f   : > { %1281 = vmatmul.mubr.bf16.gmra.mrb[20].mxu0 %v3236_v37  ;;  %1537 = vmatmul.mubr.bf16.gmra.mrb[20].mxu1 %v3237_v38  ;;  %v3332_v37 = vld [vmem:[%s3571_s11 + $0x150] ss:$8 sps:$4 sm:$0xff]  }
  0x60   : > { %2792 = vmatprep.mubr.msk.bf16.mxu0 %vm1008_vm0, %v3238_v39  ;;  %2824 = vmatprep.mubr.msk.bf16.mxu1 %vm1008_vm0, %v3240_v40  ;;  %v3333_v38 = vld [vmem:[%s3571_s11 + $0x350] ss:$8 sps:$4 sm:$0xff]   ;;  %v3334_v39 = vld [vmem:[%s3571_s11 + $0x164] ss:$8 sps:$4 sm:$0xff]  }
  0x61   : > { %v3336_v40 = vld [vmem:[%s3571_s11 + $0x364] ss:$8 sps:$4 sm:$0xff]  }
  0x67   : > { %1289 = vmatmul.mubr.bf16.gmra.mrb[24].mxu0 %v3242_v41  ;;  %1545 = vmatmul.mubr.bf16.gmra.mrb[24].mxu1 %v3243_v42  ;;  %v3338_v41 = vld [vmem:[%s3571_s11 + $0x160] ss:$8 sps:$4 sm:$0xff]  }
  0x68   : > { %2793 = vmatprep.mubr.msk.bf16.mxu0 %vm1008_vm0, %v3244_v43  ;;  %2825 = vmatprep.mubr.msk.bf16.mxu1 %vm1008_vm0, %v3246_v44  ;;  %v3339_v42 = vld [vmem:[%s3571_s11 + $0x360] ss:$8 sps:$4 sm:$0xff]   ;;  %v3340_v43 = vld [vmem:[%s3571_s11 + $0x174] ss:$8 sps:$4 sm:$0xff]  }
  0x69   : > { %v3342_v44 = vld [vmem:[%s3571_s11 + $0x374] ss:$8 sps:$4 sm:$0xff]  }
  0x6f   : > { %1297 = vmatmul.mubr.bf16.gmra.mrb[28].mxu0 %v3248_v45  ;;  %1553 = vmatmul.mubr.bf16.gmra.mrb[28].mxu1 %v3249_v46  ;;  %v3344_v45 = vld [vmem:[%s3571_s11 + $0x170] ss:$8 sps:$4 sm:$0xff]  }
  0x70   : > { %2794 = vmatprep.mubr.msk.bf16.mxu0 %vm1008_vm0, %v3250_v47  ;;  %2826 = vmatprep.mubr.msk.bf16.mxu1 %vm1008_vm0, %v3252_v48  ;;  %v3345_v46 = vld [vmem:[%s3571_s11 + $0x370] ss:$8 sps:$4 sm:$0xff]   ;;  %v3346_v47 = vld [vmem:[%s3571_s11 + $0x184] ss:$8 sps:$4 sm:$0xff]  }
  0x71   : > { %v3348_v48 = vld [vmem:[%s3571_s11 + $0x384] ss:$8 sps:$4 sm:$0xff]  }
  0x77   : > { %1305 = vmatmul.mubr.bf16.gmra.mrb[32].mxu0 %v3254_v49  ;;  %1561 = vmatmul.mubr.bf16.gmra.mrb[32].mxu1 %v3255_v50  ;;  %v3350_v49 = vld [vmem:[%s3571_s11 + $0x180] ss:$8 sps:$4 sm:$0xff]  }
  0x78   : > { %2795 = vmatprep.mubr.msk.bf16.mxu0 %vm1008_vm0, %v3256_v51  ;;  %2827 = vmatprep.mubr.msk.bf16.mxu1 %vm1008_vm0, %v3258_v52  ;;  %v3351_v50 = vld [vmem:[%s3571_s11 + $0x380] ss:$8 sps:$4 sm:$0xff]   ;;  %v3352_v51 = vld [vmem:[%s3571_s11 + $0x194] ss:$8 sps:$4 sm:$0xff]  }
  0x79   : > { %v3354_v52 = vld [vmem:[%s3571_s11 + $0x394] ss:$8 sps:$4 sm:$0xff]  }
  0x7f   : > { %1313 = vmatmul.mubr.bf16.gmra.mrb[36].mxu0 %v3260_v53  ;;  %1569 = vmatmul.mubr.bf16.gmra.mrb[36].mxu1 %v3261_v54  ;;  %v3356_v53 = vld [vmem:[%s3571_s11 + $0x190] ss:$8 sps:$4 sm:$0xff]  }
  0x80   : > { %2796 = vmatprep.mubr.msk.bf16.mxu0 %vm1008_vm0, %v3262_v55  ;;  %2828 = vmatprep.mubr.msk.bf16.mxu1 %vm1008_vm0, %v3264_v56  ;;  %v3357_v54 = vld [vmem:[%s3571_s11 + $0x390] ss:$8 sps:$4 sm:$0xff]   ;;  %v3358_v55 = vld [vmem:[%s3571_s11 + $0x1a4] ss:$8 sps:$4 sm:$0xff]  }
  0x81   : > { %v3360_v56 = vld [vmem:[%s3571_s11 + $0x3a4] ss:$8 sps:$4 sm:$0xff]  }
  0x87   : > { %1321 = vmatmul.mubr.bf16.gmra.mrb[40].mxu0 %v3266_v57  ;;  %1577 = vmatmul.mubr.bf16.gmra.mrb[40].mxu1 %v3267_v58  ;;  %v3362_v57 = vld [vmem:[%s3571_s11 + $0x1a0] ss:$8 sps:$4 sm:$0xff]  }
  0x88   : > { %2797 = vmatprep.mubr.msk.bf16.mxu0 %vm1008_vm0, %v3268_v59  ;;  %2829 = vmatprep.mubr.msk.bf16.mxu1 %vm1008_vm0, %v3270_v60  ;;  %v3363_v58 = vld [vmem:[%s3571_s11 + $0x3a0] ss:$8 sps:$4 sm:$0xff]   ;;  %v3364_v59 = vld [vmem:[%s3571_s11 + $0x1b4] ss:$8 sps:$4 sm:$0xff]  }
  0x89   : > { %v3366_v60 = vld [vmem:[%s3571_s11 + $0x3b4] ss:$8 sps:$4 sm:$0xff]  }
  0x8f   : > { %1329 = vmatmul.mubr.bf16.gmra.mrb[44].mxu0 %v3272_v61  ;;  %1585 = vmatmul.mubr.bf16.gmra.mrb[44].mxu1 %v3273_v62  ;;  %v3759_v61 = vld [vmem:[%s4241_s2] ss:$0 sm:$0xff] }
  0x90   : > { %2798 = vmatprep.mubr.msk.bf16.mxu0 %vm1008_vm0, %v3274_v63  ;;  %2830 = vmatprep.mubr.msk.bf16.mxu1 %vm1008_vm0, %v3276_v0 }
  0x97   : > { %1337 = vmatmul.mubr.bf16.gmra.mrb[48].mxu0 %v3278_v1  ;;  %1593 = vmatmul.mubr.bf16.gmra.mrb[48].mxu1 %v3279_v2 }
  0x98   : > { %2799 = vmatprep.mubr.msk.bf16.mxu0 %vm1008_vm0, %v3280_v3  ;;  %2831 = vmatprep.mubr.msk.bf16.mxu1 %vm1008_vm0, %v3282_v4  ;;  %v3368_v4 = vld [vmem:[%s3571_s11 + $0x1b0] ss:$8 sps:$4 sm:$0xff]  }
  0x9f   : > { %1345 = vmatmul.mubr.bf16.gmra.mrb[52].mxu0 %v3284_v5  ;;  %1601 = vmatmul.mubr.bf16.gmra.mrb[52].mxu1 %v3285_v6  ;;  %v3369_v5 = vld [vmem:[%s3571_s11 + $0x3b0] ss:$8 sps:$4 sm:$0xff]  }
  0xa0   : > { %2800 = vmatprep.mubr.msk.bf16.mxu0 %vm1008_vm0, %v3286_v7  ;;  %2832 = vmatprep.mubr.msk.bf16.mxu1 %vm1008_vm0, %v3288_v8  ;;  %v3370_v8 = vld [vmem:[%s3571_s11 + $0x1c4] ss:$8 sps:$4 sm:$0xff]  }
  0xa7   : > { %1353 = vmatmul.mubr.bf16.gmra.mrb[56].mxu0 %v3290_v9  ;;  %1609 = vmatmul.mubr.bf16.gmra.mrb[56].mxu1 %v3291_v10  ;;  %v3372_v9 = vld [vmem:[%s3571_s11 + $0x3c4] ss:$8 sps:$4 sm:$0xff]  }
  0xa8   : > { %2801 = vmatprep.mubr.msk.bf16.mxu0 %vm1008_vm0, %v3292_v11  ;;  %2833 = vmatprep.mubr.msk.bf16.mxu1 %vm1008_vm0, %v3294_v12 }
  0xaf   : > { %1361 = vmatmul.mubr.bf16.gmra.mrb[60].mxu0 %v3296_v13  ;;  %1617 = vmatmul.mubr.bf16.gmra.mrb[60].mxu1 %v3297_v14 }
  0xb0   : > { %2802 = vmatprep.mubr.msk.bf16.mxu0 %vm1008_vm0, %v3298_v15  ;;  %2834 = vmatprep.mubr.msk.bf16.mxu1 %vm1008_vm0, %v3300_v16 }
  0xb7   : > { %1369 = vmatmul.mubr.bf16.gmra.mrb[64].mxu0 %v3302_v17  ;;  %1625 = vmatmul.mubr.bf16.gmra.mrb[64].mxu1 %v3303_v18 }
  0xb8   : > { %2803 = vmatprep.mubr.msk.bf16.mxu0 %vm1008_vm0, %v3304_v19  ;;  %2835 = vmatprep.mubr.msk.bf16.mxu1 %vm1008_vm0, %v3306_v20 }
  0xbf   : > { %1377 = vmatmul.mubr.bf16.gmra.mrb[68].mxu0 %v3308_v21  ;;  %1633 = vmatmul.mubr.bf16.gmra.mrb[68].mxu1 %v3309_v22 }
  0xc0   : > { %2804 = vmatprep.mubr.msk.bf16.mxu0 %vm1008_vm0, %v3310_v23  ;;  %2836 = vmatprep.mubr.msk.bf16.mxu1 %vm1008_vm0, %v3312_v24 }
  0xc7   : > { %1385 = vmatmul.mubr.bf16.gmra.mrb[72].mxu0 %v3314_v25  ;;  %1641 = vmatmul.mubr.bf16.gmra.mrb[72].mxu1 %v3315_v26 }
  0xc8   : > { %2805 = vmatprep.mubr.msk.bf16.mxu0 %vm1008_vm0, %v3316_v27  ;;  %2837 = vmatprep.mubr.msk.bf16.mxu1 %vm1008_vm0, %v3318_v28  ;;  %v3374_v28 = vld [vmem:[%s3571_s11 + $0x1c0] ss:$8 sps:$4 sm:$0xff]  }
  0xcf   : > { %1393 = vmatmul.mubr.bf16.gmra.mrb[76].mxu0 %v3320_v29  ;;  %1649 = vmatmul.mubr.bf16.gmra.mrb[76].mxu1 %v3321_v30  ;;  %v3375_v29 = vld [vmem:[%s3571_s11 + $0x3c0] ss:$8 sps:$4 sm:$0xff]  }
  0xd0   : > { %2806 = vmatprep.mubr.msk.bf16.mxu0 %vm1008_vm0, %v3322_v31  ;;  %2838 = vmatprep.mubr.msk.bf16.mxu1 %vm1008_vm0, %v3324_v32  ;;  %v3376_v32 = vld [vmem:[%s3571_s11 + $0x1d4] ss:$8 sps:$4 sm:$0xff]  }
  0xd7   : > { %1401 = vmatmul.mubr.bf16.gmra.mrb[80].mxu0 %v3326_v33  ;;  %1657 = vmatmul.mubr.bf16.gmra.mrb[80].mxu1 %v3327_v34  ;;  %v3378_v33 = vld [vmem:[%s3571_s11 + $0x3d4] ss:$8 sps:$4 sm:$0xff]  }
  0xd8   : > { %2807 = vmatprep.mubr.msk.bf16.mxu0 %vm1008_vm0, %v3328_v35  ;;  %2839 = vmatprep.mubr.msk.bf16.mxu1 %vm1008_vm0, %v3330_v36 }
  0xdf   : > { %1409 = vmatmul.mubr.bf16.gmra.mrb[84].mxu0 %v3332_v37  ;;  %1665 = vmatmul.mubr.bf16.gmra.mrb[84].mxu1 %v3333_v38 }
  0xe0   : > { %2808 = vmatprep.mubr.msk.bf16.mxu0 %vm1008_vm0, %v3334_v39  ;;  %2840 = vmatprep.mubr.msk.bf16.mxu1 %vm1008_vm0, %v3336_v40 }
  0xe7   : > { %1417 = vmatmul.mubr.bf16.gmra.mrb[88].mxu0 %v3338_v41  ;;  %1673 = vmatmul.mubr.bf16.gmra.mrb[88].mxu1 %v3339_v42 }
  0xe8   : > { %2809 = vmatprep.mubr.msk.bf16.mxu0 %vm1008_vm0, %v3340_v43  ;;  %2841 = vmatprep.mubr.msk.bf16.mxu1 %vm1008_vm0, %v3342_v44 }
  0xef   : > { %1425 = vmatmul.mubr.bf16.gmra.mrb[92].mxu0 %v3344_v45  ;;  %1681 = vmatmul.mubr.bf16.gmra.mrb[92].mxu1 %v3345_v46 }
  0xf0   : > { %2810 = vmatprep.mubr.msk.bf16.mxu0 %vm1008_vm0, %v3346_v47  ;;  %2842 = vmatprep.mubr.msk.bf16.mxu1 %vm1008_vm0, %v3348_v48 }
  0xf7   : > { %1433 = vmatmul.mubr.bf16.gmra.mrb[96].mxu0 %v3350_v49  ;;  %1689 = vmatmul.mubr.bf16.gmra.mrb[96].mxu1 %v3351_v50 }
  0xf8   : > { %2811 = vmatprep.mubr.msk.bf16.mxu0 %vm1008_vm0, %v3352_v51  ;;  %2843 = vmatprep.mubr.msk.bf16.mxu1 %vm1008_vm0, %v3354_v52  ;;  %v3380_v52 = vld [vmem:[%s3571_s11 + $0x1d0] ss:$8 sps:$4 sm:$0xff]  }
  0xff   : > { %1441 = vmatmul.mubr.bf16.gmra.mrb[100].mxu0 %v3356_v53  ;;  %1697 = vmatmul.mubr.bf16.gmra.mrb[100].mxu1 %v3357_v54  ;;  %v3381_v53 = vld [vmem:[%s3571_s11 + $0x3d0] ss:$8 sps:$4 sm:$0xff]  }
 0x100   : > { %2812 = vmatprep.mubr.msk.bf16.mxu0 %vm1008_vm0, %v3358_v55  ;;  %2844 = vmatprep.mubr.msk.bf16.mxu1 %vm1008_vm0, %v3360_v56  ;;  %v3382_v56 = vld [vmem:[%s3571_s11 + $0x1e4] ss:$8 sps:$4 sm:$0xff]  }
 0x107   : > { %1449 = vmatmul.mubr.bf16.gmra.mrb[104].mxu0 %v3362_v57  ;;  %1705 = vmatmul.mubr.bf16.gmra.mrb[104].mxu1 %v3363_v58  ;;  %v3384_v57 = vld [vmem:[%s3571_s11 + $0x3e4] ss:$8 sps:$4 sm:$0xff]  }
 0x108   : > { %2813 = vmatprep.mubr.msk.bf16.mxu0 %vm1008_vm0, %v3364_v59  ;;  %2845 = vmatprep.mubr.msk.bf16.mxu1 %vm1008_vm0, %v3366_v60 }
 0x10a   : > { %v1242_v62 = vpop.f32.mrb[0].mxu0  ;;  %v1498_v63 = vpop.f32.mrb[0].mxu1 }
 0x10b   : > { %v1243_v0 = vadd.f32 %v3759_v61, %v1242_v62  ;;  %v1499_v1 = vadd.f32 %v3759_v61, %v1498_v63  ;;  %v1244_v2 = vpop.f32.mrb[1].mxu0  ;;  %v1500_v3 = vpop.f32.mrb[1].mxu1 }
 0x10c   : > { %v1245_v6 = vpop.f32.mrb[2].mxu0  ;;  %v1501_v7 = vpop.f32.mrb[2].mxu1 }
 0x10d   : > { %v1753_v10 = vmax.f32 %v1243_v0, 0.0  ;;  %v1817_v11 = vmax.f32 %v1499_v1, 0.0  ;;  %v1246_v12 = vadd.f32 %v3759_v61, %v1245_v6  ;;  %v1502_v13 = vadd.f32 %v3759_v61, %v1501_v7  ;;  %v1247_v14 = vpop.f32.mrb[3].mxu0  ;;  %v1503_v15 = vpop.f32.mrb[3].mxu1 }
 0x10e   : > { %v3387_v14 = vld [vmem:[%s3571_s11 + $0x3e0] ss:$8 sps:$4 sm:$0xff]  }
 0x10f   : > { %v2984_v16 = vpack.c.bf16 %v1753_v10, %v1753_v10  ;;  %v3048_v17 = vpack.c.bf16 %v1817_v11, %v1817_v11  ;;  %v1754_v18 = vmax.f32 %v1246_v12, 0.0  ;;  %v1818_v19 = vmax.f32 %v1502_v13, 0.0  ;;  %1457 = vmatmul.mubr.bf16.gmra.mrb[108].mxu0 %v3368_v4  ;;  %1713 = vmatmul.mubr.bf16.gmra.mrb[108].mxu1 %v3369_v5  ;;  %v3386_v13 = vld [vmem:[%s3571_s11 + $0x1e0] ss:$8 sps:$4 sm:$0xff]  }
 0x110   : > { %2814 = vmatprep.mubr.msk.bf16.mxu0 %vm1008_vm0, %v3370_v8  ;;  %2846 = vmatprep.mubr.msk.bf16.mxu1 %vm1008_vm0, %v3372_v9 }
 0x111   : > { %2394 = vst.msk [vmem:[%s3775_s18] sm:$0xf] %vm2393_vm3, %v2984_v16  ;;  %2458 = vst.msk [vmem:[%s3775_s18 + $0x100] sm:$0xf] %vm2393_vm3, %v3048_v17  ;;  %v2985_v20 = vpack.c.bf16 %v1754_v18, %v1754_v18  ;;  %v3049_v21 = vpack.c.bf16 %v1818_v19, %v1818_v19  ;;  %v3388_v17 = vld [vmem:[%s3571_s11 + $0x1f4] ss:$8 sps:$4 sm:$0xff]  }
 0x112   : > { %v1250_v22 = vpop.f32.mrb[4].mxu0  ;;  %v1506_v23 = vpop.f32.mrb[4].mxu1  ;;  %v3390_v18 = vld [vmem:[%s3571_s11 + $0x3f4] ss:$8 sps:$4 sm:$0xff]  }
 0x113   : > { %2395 = vst.msk [vmem:[%s3775_s18 + $0x4] sm:$0xf] %vm2393_vm3, %v2985_v20  ;;  %2459 = vst.msk [vmem:[%s3775_s18 + $0x104] sm:$0xf] %vm2393_vm3, %v3049_v21  ;;  %v1251_v24 = vadd.f32 %v3759_v61, %v1250_v22  ;;  %v1507_v25 = vadd.f32 %v3759_v61, %v1506_v23  ;;  %v1252_v26 = vpop.f32.mrb[5].mxu0  ;;  %v1508_v27 = vpop.f32.mrb[5].mxu1 }
 0x114   : > { %v1253_v30 = vpop.f32.mrb[6].mxu0  ;;  %v1509_v31 = vpop.f32.mrb[6].mxu1 }
 0x115   : > { %v1755_v34 = vmax.f32 %v1251_v24, 0.0  ;;  %v1819_v35 = vmax.f32 %v1507_v25, 0.0  ;;  %v1254_v36 = vadd.f32 %v3759_v61, %v1253_v30  ;;  %v1510_v37 = vadd.f32 %v3759_v61, %v1509_v31  ;;  %v1255_v38 = vpop.f32.mrb[7].mxu0  ;;  %v1511_v39 = vpop.f32.mrb[7].mxu1 }
 0x116   : > { %v3393_v38 = vld [vmem:[%s3571_s11 + $0x3f0] ss:$8 sps:$4 sm:$0xff]  }
 0x117   : > { %v2986_v40 = vpack.c.bf16 %v1755_v34, %v1755_v34  ;;  %v3050_v41 = vpack.c.bf16 %v1819_v35, %v1819_v35  ;;  %v1756_v42 = vmax.f32 %v1254_v36, 0.0  ;;  %v1820_v43 = vmax.f32 %v1510_v37, 0.0  ;;  %1465 = vmatmul.mubr.bf16.gmra.mrb[112].mxu0 %v3374_v28  ;;  %1721 = vmatmul.mubr.bf16.gmra.mrb[112].mxu1 %v3375_v29  ;;  %v3392_v37 = vld [vmem:[%s3571_s11 + $0x1f0] ss:$8 sps:$4 sm:$0xff]  }
 0x118   : > { %2815 = vmatprep.mubr.msk.bf16.mxu0 %vm1008_vm0, %v3376_v32  ;;  %2847 = vmatprep.mubr.msk.bf16.mxu1 %vm1008_vm0, %v3378_v33 }
 0x119   : > { %2396 = vst.msk [vmem:[%s3775_s18 + $0x8] sm:$0xf] %vm2393_vm3, %v2986_v40  ;;  %2460 = vst.msk [vmem:[%s3775_s18 + $0x108] sm:$0xf] %vm2393_vm3, %v3050_v41  ;;  %v2987_v44 = vpack.c.bf16 %v1756_v42, %v1756_v42  ;;  %v3051_v45 = vpack.c.bf16 %v1820_v43, %v1820_v43 }
 0x11a   : > { %v1258_v46 = vpop.f32.mrb[8].mxu0  ;;  %v1514_v47 = vpop.f32.mrb[8].mxu1 }
 0x11b   : > { %2397 = vst.msk [vmem:[%s3775_s18 + $0xc] sm:$0xf] %vm2393_vm3, %v2987_v44  ;;  %2461 = vst.msk [vmem:[%s3775_s18 + $0x10c] sm:$0xf] %vm2393_vm3, %v3051_v45  ;;  %v1259_v48 = vadd.f32 %v3759_v61, %v1258_v46  ;;  %v1515_v49 = vadd.f32 %v3759_v61, %v1514_v47  ;;  %v1260_v50 = vpop.f32.mrb[9].mxu0  ;;  %v1516_v51 = vpop.f32.mrb[9].mxu1 }
 0x11c   : > { %v1261_v54 = vpop.f32.mrb[10].mxu0  ;;  %v1517_v55 = vpop.f32.mrb[10].mxu1 }
 0x11d   : > { %v1757_v58 = vmax.f32 %v1259_v48, 0.0  ;;  %v1821_v59 = vmax.f32 %v1515_v49, 0.0  ;;  %v1262_v60 = vadd.f32 %v3759_v61, %v1261_v54  ;;  %v1518_v62 = vadd.f32 %v3759_v61, %v1517_v55  ;;  %v1263_v63 = vpop.f32.mrb[11].mxu0  ;;  %v1519_v0 = vpop.f32.mrb[11].mxu1 }
 0x11f   : > { %v2988_v1 = vpack.c.bf16 %v1757_v58, %v1757_v58  ;;  %v3052_v2 = vpack.c.bf16 %v1821_v59, %v1821_v59  ;;  %v1758_v3 = vmax.f32 %v1262_v60, 0.0  ;;  %v1822_v4 = vmax.f32 %v1518_v62, 0.0  ;;  %1473 = vmatmul.mubr.bf16.gmra.mrb[116].mxu0 %v3380_v52  ;;  %1729 = vmatmul.mubr.bf16.gmra.mrb[116].mxu1 %v3381_v53 }
 0x120   : > { %2816 = vmatprep.mubr.msk.bf16.mxu0 %vm1008_vm0, %v3382_v56  ;;  %2848 = vmatprep.mubr.msk.bf16.mxu1 %vm1008_vm0, %v3384_v57 }
 0x121   : > { %2398 = vst.msk [vmem:[%s3775_s18 + $0x10] sm:$0xf] %vm2393_vm3, %v2988_v1  ;;  %2462 = vst.msk [vmem:[%s3775_s18 + $0x110] sm:$0xf] %vm2393_vm3, %v3052_v2  ;;  %v2989_v5 = vpack.c.bf16 %v1758_v3, %v1758_v3  ;;  %v3053_v6 = vpack.c.bf16 %v1822_v4, %v1822_v4 }
 0x122   : > { %v1266_v7 = vpop.f32.mrb[12].mxu0  ;;  %v1522_v8 = vpop.f32.mrb[12].mxu1 }
 0x123   : > { %2399 = vst.msk [vmem:[%s3775_s18 + $0x14] sm:$0xf] %vm2393_vm3, %v2989_v5  ;;  %2463 = vst.msk [vmem:[%s3775_s18 + $0x114] sm:$0xf] %vm2393_vm3, %v3053_v6  ;;  %v1267_v9 = vadd.f32 %v3759_v61, %v1266_v7  ;;  %v1523_v10 = vadd.f32 %v3759_v61, %v1522_v8  ;;  %v1268_v11 = vpop.f32.mrb[13].mxu0  ;;  %v1524_v12 = vpop.f32.mrb[13].mxu1 }
 0x124   : > { %v1269_v15 = vpop.f32.mrb[14].mxu0  ;;  %v1525_v16 = vpop.f32.mrb[14].mxu1 }
 0x125   : > { %v1759_v19 = vmax.f32 %v1267_v9, 0.0  ;;  %v1823_v20 = vmax.f32 %v1523_v10, 0.0  ;;  %v1270_v21 = vadd.f32 %v3759_v61, %v1269_v15  ;;  %v1526_v22 = vadd.f32 %v3759_v61, %v1525_v16  ;;  %v1271_v23 = vpop.f32.mrb[15].mxu0  ;;  %v1527_v24 = vpop.f32.mrb[15].mxu1 }
 0x127   : > { %v2990_v25 = vpack.c.bf16 %v1759_v19, %v1759_v19  ;;  %v3054_v26 = vpack.c.bf16 %v1823_v20, %v1823_v20  ;;  %v1760_v27 = vmax.f32 %v1270_v21, 0.0  ;;  %v1824_v28 = vmax.f32 %v1526_v22, 0.0  ;;  %1481 = vmatmul.mubr.bf16.gmra.mrb[120].mxu0 %v3386_v13  ;;  %1737 = vmatmul.mubr.bf16.gmra.mrb[120].mxu1 %v3387_v14 }
 0x128   : > { %2817 = vmatprep.mubr.msk.bf16.mxu0 %vm1008_vm0, %v3388_v17  ;;  %2849 = vmatprep.mubr.msk.bf16.mxu1 %vm1008_vm0, %v3390_v18 }
 0x129   : > { %2400 = vst.msk [vmem:[%s3775_s18 + $0x18] sm:$0xf] %vm2393_vm3, %v2990_v25  ;;  %2464 = vst.msk [vmem:[%s3775_s18 + $0x118] sm:$0xf] %vm2393_vm3, %v3054_v26  ;;  %v2991_v29 = vpack.c.bf16 %v1760_v27, %v1760_v27  ;;  %v3055_v30 = vpack.c.bf16 %v1824_v28, %v1824_v28 }
 0x12a   : > { %v1274_v31 = vpop.f32.mrb[16].mxu0  ;;  %v1530_v32 = vpop.f32.mrb[16].mxu1 }
 0x12b   : > { %2401 = vst.msk [vmem:[%s3775_s18 + $0x1c] sm:$0xf] %vm2393_vm3, %v2991_v29  ;;  %2465 = vst.msk [vmem:[%s3775_s18 + $0x11c] sm:$0xf] %vm2393_vm3, %v3055_v30  ;;  %v1275_v33 = vadd.f32 %v3759_v61, %v1274_v31  ;;  %v1531_v34 = vadd.f32 %v3759_v61, %v1530_v32  ;;  %v1276_v35 = vpop.f32.mrb[17].mxu0  ;;  %v1532_v36 = vpop.f32.mrb[17].mxu1 }
 0x12c   : > { %v1277_v39 = vpop.f32.mrb[18].mxu0  ;;  %v1533_v40 = vpop.f32.mrb[18].mxu1 }
 0x12d   : > { %v1761_v41 = vmax.f32 %v1275_v33, 0.0  ;;  %v1825_v42 = vmax.f32 %v1531_v34, 0.0  ;;  %v1278_v43 = vadd.f32 %v3759_v61, %v1277_v39  ;;  %v1534_v44 = vadd.f32 %v3759_v61, %v1533_v40  ;;  %v1279_v45 = vpop.f32.mrb[19].mxu0  ;;  %v1535_v46 = vpop.f32.mrb[19].mxu1 }
 0x12f   : > { %v2992_v47 = vpack.c.bf16 %v1761_v41, %v1761_v41  ;;  %v3056_v48 = vpack.c.bf16 %v1825_v42, %v1825_v42  ;;  %v1762_v49 = vmax.f32 %v1278_v43, 0.0  ;;  %v1826_v50 = vmax.f32 %v1534_v44, 0.0  ;;  %1489 = vmatmul.mubr.bf16.gmra.mrb[124].mxu0 %v3392_v37  ;;  %1745 = vmatmul.mubr.bf16.gmra.mrb[124].mxu1 %v3393_v38 }
 0x131   : > { %2402 = vst.msk [vmem:[%s3775_s18 + $0x20] sm:$0xf] %vm2393_vm3, %v2992_v47  ;;  %2466 = vst.msk [vmem:[%s3775_s18 + $0x120] sm:$0xf] %vm2393_vm3, %v3056_v48  ;;  %v2993_v51 = vpack.c.bf16 %v1762_v49, %v1762_v49  ;;  %v3057_v52 = vpack.c.bf16 %v1826_v50, %v1826_v50 }
 0x132   : > { %v1282_v53 = vpop.f32.mrb[20].mxu0  ;;  %v1538_v54 = vpop.f32.mrb[20].mxu1 }
 0x133   : > { %2403 = vst.msk [vmem:[%s3775_s18 + $0x24] sm:$0xf] %vm2393_vm3, %v2993_v51  ;;  %2467 = vst.msk [vmem:[%s3775_s18 + $0x124] sm:$0xf] %vm2393_vm3, %v3057_v52  ;;  %v1283_v55 = vadd.f32 %v3759_v61, %v1282_v53  ;;  %v1539_v56 = vadd.f32 %v3759_v61, %v1538_v54  ;;  %v1284_v57 = vpop.f32.mrb[21].mxu0  ;;  %v1540_v58 = vpop.f32.mrb[21].mxu1 }
 0x134   : > { %v1285_v59 = vpop.f32.mrb[22].mxu0  ;;  %v1541_v60 = vpop.f32.mrb[22].mxu1 }
 0x135   : > { %v1763_v62 = vmax.f32 %v1283_v55, 0.0  ;;  %v1827_v63 = vmax.f32 %v1539_v56, 0.0  ;;  %v1286_v0 = vadd.f32 %v3759_v61, %v1285_v59  ;;  %v1542_v1 = vadd.f32 %v3759_v61, %v1541_v60  ;;  %v1287_v2 = vpop.f32.mrb[23].mxu0  ;;  %v1543_v3 = vpop.f32.mrb[23].mxu1 }
 0x137   : > { %v2994_v4 = vpack.c.bf16 %v1763_v62, %v1763_v62  ;;  %v3058_v5 = vpack.c.bf16 %v1827_v63, %v1827_v63  ;;  %v1764_v6 = vmax.f32 %v1286_v0, 0.0  ;;  %v1828_v7 = vmax.f32 %v1542_v1, 0.0 }
 0x139   : > { %2404 = vst.msk [vmem:[%s3775_s18 + $0x28] sm:$0xf] %vm2393_vm3, %v2994_v4  ;;  %2468 = vst.msk [vmem:[%s3775_s18 + $0x128] sm:$0xf] %vm2393_vm3, %v3058_v5  ;;  %v2995_v8 = vpack.c.bf16 %v1764_v6, %v1764_v6  ;;  %v3059_v9 = vpack.c.bf16 %v1828_v7, %v1828_v7 }
 0x13a   : > { %v1290_v10 = vpop.f32.mrb[24].mxu0  ;;  %v1546_v11 = vpop.f32.mrb[24].mxu1 }
 0x13b   : > { %2405 = vst.msk [vmem:[%s3775_s18 + $0x2c] sm:$0xf] %vm2393_vm3, %v2995_v8  ;;  %2469 = vst.msk [vmem:[%s3775_s18 + $0x12c] sm:$0xf] %vm2393_vm3, %v3059_v9  ;;  %v1291_v12 = vadd.f32 %v3759_v61, %v1290_v10  ;;  %v1547_v13 = vadd.f32 %v3759_v61, %v1546_v11  ;;  %v1292_v14 = vpop.f32.mrb[25].mxu0  ;;  %v1548_v15 = vpop.f32.mrb[25].mxu1 }
 0x13c   : > { %v1293_v16 = vpop.f32.mrb[26].mxu0  ;;  %v1549_v17 = vpop.f32.mrb[26].mxu1 }
 0x13d   : > { %v1765_v18 = vmax.f32 %v1291_v12, 0.0  ;;  %v1829_v19 = vmax.f32 %v1547_v13, 0.0  ;;  %v1294_v20 = vadd.f32 %v3759_v61, %v1293_v16  ;;  %v1550_v21 = vadd.f32 %v3759_v61, %v1549_v17  ;;  %v1295_v22 = vpop.f32.mrb[27].mxu0  ;;  %v1551_v23 = vpop.f32.mrb[27].mxu1 }
 0x13f   : > { %v2996_v24 = vpack.c.bf16 %v1765_v18, %v1765_v18  ;;  %v3060_v25 = vpack.c.bf16 %v1829_v19, %v1829_v19  ;;  %v1766_v26 = vmax.f32 %v1294_v20, 0.0  ;;  %v1830_v27 = vmax.f32 %v1550_v21, 0.0 }
 0x141   : > { %2406 = vst.msk [vmem:[%s3775_s18 + $0x30] sm:$0xf] %vm2393_vm3, %v2996_v24  ;;  %2470 = vst.msk [vmem:[%s3775_s18 + $0x130] sm:$0xf] %vm2393_vm3, %v3060_v25  ;;  %v2997_v28 = vpack.c.bf16 %v1766_v26, %v1766_v26  ;;  %v3061_v29 = vpack.c.bf16 %v1830_v27, %v1830_v27 }
 0x142   : > { %v1298_v30 = vpop.f32.mrb[28].mxu0  ;;  %v1554_v31 = vpop.f32.mrb[28].mxu1 }
 0x143   : > { %2407 = vst.msk [vmem:[%s3775_s18 + $0x34] sm:$0xf] %vm2393_vm3, %v2997_v28  ;;  %2471 = vst.msk [vmem:[%s3775_s18 + $0x134] sm:$0xf] %vm2393_vm3, %v3061_v29  ;;  %v1299_v32 = vadd.f32 %v3759_v61, %v1298_v30  ;;  %v1555_v33 = vadd.f32 %v3759_v61, %v1554_v31  ;;  %v1300_v34 = vpop.f32.mrb[29].mxu0  ;;  %v1556_v35 = vpop.f32.mrb[29].mxu1 }
 0x144   : > { %v1301_v36 = vpop.f32.mrb[30].mxu0  ;;  %v1557_v37 = vpop.f32.mrb[30].mxu1 }
 0x145   : > { %v1767_v38 = vmax.f32 %v1299_v32, 0.0  ;;  %v1831_v39 = vmax.f32 %v1555_v33, 0.0  ;;  %v1302_v40 = vadd.f32 %v3759_v61, %v1301_v36  ;;  %v1558_v41 = vadd.f32 %v3759_v61, %v1557_v37  ;;  %v1303_v42 = vpop.f32.mrb[31].mxu0  ;;  %v1559_v43 = vpop.f32.mrb[31].mxu1 }
 0x147   : > { %v2998_v44 = vpack.c.bf16 %v1767_v38, %v1767_v38  ;;  %v3062_v45 = vpack.c.bf16 %v1831_v39, %v1831_v39  ;;  %v1768_v46 = vmax.f32 %v1302_v40, 0.0  ;;  %v1832_v47 = vmax.f32 %v1558_v41, 0.0 }
 0x149   : > { %2408 = vst.msk [vmem:[%s3775_s18 + $0x38] sm:$0xf] %vm2393_vm3, %v2998_v44  ;;  %2472 = vst.msk [vmem:[%s3775_s18 + $0x138] sm:$0xf] %vm2393_vm3, %v3062_v45  ;;  %v2999_v48 = vpack.c.bf16 %v1768_v46, %v1768_v46  ;;  %v3063_v49 = vpack.c.bf16 %v1832_v47, %v1832_v47 }
 0x14a   : > { %v1306_v50 = vpop.f32.mrb[32].mxu0  ;;  %v1562_v51 = vpop.f32.mrb[32].mxu1 }
 0x14b   : > { %2409 = vst.msk [vmem:[%s3775_s18 + $0x3c] sm:$0xf] %vm2393_vm3, %v2999_v48  ;;  %2473 = vst.msk [vmem:[%s3775_s18 + $0x13c] sm:$0xf] %vm2393_vm3, %v3063_v49  ;;  %v1307_v52 = vadd.f32 %v3759_v61, %v1306_v50  ;;  %v1563_v53 = vadd.f32 %v3759_v61, %v1562_v51  ;;  %v1308_v54 = vpop.f32.mrb[33].mxu0  ;;  %v1564_v55 = vpop.f32.mrb[33].mxu1 }
 0x14c   : > { %v1309_v56 = vpop.f32.mrb[34].mxu0  ;;  %v1565_v57 = vpop.f32.mrb[34].mxu1 }
 0x14d   : > { %v1769_v58 = vmax.f32 %v1307_v52, 0.0  ;;  %v1833_v59 = vmax.f32 %v1563_v53, 0.0  ;;  %v1310_v60 = vadd.f32 %v3759_v61, %v1309_v56  ;;  %v1566_v62 = vadd.f32 %v3759_v61, %v1565_v57  ;;  %v1311_v63 = vpop.f32.mrb[35].mxu0  ;;  %v1567_v0 = vpop.f32.mrb[35].mxu1 }
 0x14f   : > { %v3000_v1 = vpack.c.bf16 %v1769_v58, %v1769_v58  ;;  %v3064_v2 = vpack.c.bf16 %v1833_v59, %v1833_v59  ;;  %v1770_v3 = vmax.f32 %v1310_v60, 0.0  ;;  %v1834_v4 = vmax.f32 %v1566_v62, 0.0 }
 0x151   : > { %2410 = vst.msk [vmem:[%s3775_s18 + $0x40] sm:$0xf] %vm2393_vm3, %v3000_v1  ;;  %2474 = vst.msk [vmem:[%s3775_s18 + $0x140] sm:$0xf] %vm2393_vm3, %v3064_v2  ;;  %v3001_v5 = vpack.c.bf16 %v1770_v3, %v1770_v3  ;;  %v3065_v6 = vpack.c.bf16 %v1834_v4, %v1834_v4 }
 0x152   : > { %v1314_v7 = vpop.f32.mrb[36].mxu0  ;;  %v1570_v8 = vpop.f32.mrb[36].mxu1 }
 0x153   : > { %2411 = vst.msk [vmem:[%s3775_s18 + $0x44] sm:$0xf] %vm2393_vm3, %v3001_v5  ;;  %2475 = vst.msk [vmem:[%s3775_s18 + $0x144] sm:$0xf] %vm2393_vm3, %v3065_v6  ;;  %v1315_v9 = vadd.f32 %v3759_v61, %v1314_v7  ;;  %v1571_v10 = vadd.f32 %v3759_v61, %v1570_v8  ;;  %v1316_v11 = vpop.f32.mrb[37].mxu0  ;;  %v1572_v12 = vpop.f32.mrb[37].mxu1 }
 0x154   : > { %v1317_v13 = vpop.f32.mrb[38].mxu0  ;;  %v1573_v14 = vpop.f32.mrb[38].mxu1 }
 0x155   : > { %v1771_v15 = vmax.f32 %v1315_v9, 0.0  ;;  %v1835_v16 = vmax.f32 %v1571_v10, 0.0  ;;  %v1318_v17 = vadd.f32 %v3759_v61, %v1317_v13  ;;  %v1574_v18 = vadd.f32 %v3759_v61, %v1573_v14  ;;  %v1319_v19 = vpop.f32.mrb[39].mxu0  ;;  %v1575_v20 = vpop.f32.mrb[39].mxu1 }
 0x157   : > { %v3002_v21 = vpack.c.bf16 %v1771_v15, %v1771_v15  ;;  %v3066_v22 = vpack.c.bf16 %v1835_v16, %v1835_v16  ;;  %v1772_v23 = vmax.f32 %v1318_v17, 0.0  ;;  %v1836_v24 = vmax.f32 %v1574_v18, 0.0 }
 0x159   : > { %2412 = vst.msk [vmem:[%s3775_s18 + $0x48] sm:$0xf] %vm2393_vm3, %v3002_v21  ;;  %2476 = vst.msk [vmem:[%s3775_s18 + $0x148] sm:$0xf] %vm2393_vm3, %v3066_v22  ;;  %v3003_v25 = vpack.c.bf16 %v1772_v23, %v1772_v23  ;;  %v3067_v26 = vpack.c.bf16 %v1836_v24, %v1836_v24 }
 0x15a   : > { %v1322_v27 = vpop.f32.mrb[40].mxu0  ;;  %v1578_v28 = vpop.f32.mrb[40].mxu1 }
 0x15b   : > { %2413 = vst.msk [vmem:[%s3775_s18 + $0x4c] sm:$0xf] %vm2393_vm3, %v3003_v25  ;;  %2477 = vst.msk [vmem:[%s3775_s18 + $0x14c] sm:$0xf] %vm2393_vm3, %v3067_v26  ;;  %v1323_v29 = vadd.f32 %v3759_v61, %v1322_v27  ;;  %v1579_v30 = vadd.f32 %v3759_v61, %v1578_v28  ;;  %v1324_v31 = vpop.f32.mrb[41].mxu0  ;;  %v1580_v32 = vpop.f32.mrb[41].mxu1 }
 0x15c   : > { %v1325_v33 = vpop.f32.mrb[42].mxu0  ;;  %v1581_v34 = vpop.f32.mrb[42].mxu1 }
 0x15d   : > { %v1773_v35 = vmax.f32 %v1323_v29, 0.0  ;;  %v1837_v36 = vmax.f32 %v1579_v30, 0.0  ;;  %v1326_v37 = vadd.f32 %v3759_v61, %v1325_v33  ;;  %v1582_v38 = vadd.f32 %v3759_v61, %v1581_v34  ;;  %v1327_v39 = vpop.f32.mrb[43].mxu0  ;;  %v1583_v40 = vpop.f32.mrb[43].mxu1 }
 0x15f   : > { %v3004_v41 = vpack.c.bf16 %v1773_v35, %v1773_v35  ;;  %v3068_v42 = vpack.c.bf16 %v1837_v36, %v1837_v36  ;;  %v1774_v43 = vmax.f32 %v1326_v37, 0.0  ;;  %v1838_v44 = vmax.f32 %v1582_v38, 0.0 }
 0x161   : > { %2414 = vst.msk [vmem:[%s3775_s18 + $0x50] sm:$0xf] %vm2393_vm3, %v3004_v41  ;;  %2478 = vst.msk [vmem:[%s3775_s18 + $0x150] sm:$0xf] %vm2393_vm3, %v3068_v42  ;;  %v3005_v45 = vpack.c.bf16 %v1774_v43, %v1774_v43  ;;  %v3069_v46 = vpack.c.bf16 %v1838_v44, %v1838_v44 }
 0x162   : > { %v1330_v47 = vpop.f32.mrb[44].mxu0  ;;  %v1586_v48 = vpop.f32.mrb[44].mxu1 }
 0x163   : > { %2415 = vst.msk [vmem:[%s3775_s18 + $0x54] sm:$0xf] %vm2393_vm3, %v3005_v45  ;;  %2479 = vst.msk [vmem:[%s3775_s18 + $0x154] sm:$0xf] %vm2393_vm3, %v3069_v46  ;;  %v1331_v49 = vadd.f32 %v3759_v61, %v1330_v47  ;;  %v1587_v50 = vadd.f32 %v3759_v61, %v1586_v48  ;;  %v1332_v51 = vpop.f32.mrb[45].mxu0  ;;  %v1588_v52 = vpop.f32.mrb[45].mxu1 }
 0x164   : > { %v1333_v53 = vpop.f32.mrb[46].mxu0  ;;  %v1589_v54 = vpop.f32.mrb[46].mxu1 }
 0x165   : > { %v1775_v55 = vmax.f32 %v1331_v49, 0.0  ;;  %v1839_v56 = vmax.f32 %v1587_v50, 0.0  ;;  %v1334_v57 = vadd.f32 %v3759_v61, %v1333_v53  ;;  %v1590_v58 = vadd.f32 %v3759_v61, %v1589_v54  ;;  %v1335_v59 = vpop.f32.mrb[47].mxu0  ;;  %v1591_v60 = vpop.f32.mrb[47].mxu1 }
 0x167   : > { %v3006_v62 = vpack.c.bf16 %v1775_v55, %v1775_v55  ;;  %v3070_v63 = vpack.c.bf16 %v1839_v56, %v1839_v56  ;;  %v1776_v0 = vmax.f32 %v1334_v57, 0.0  ;;  %v1840_v1 = vmax.f32 %v1590_v58, 0.0 }
 0x169   : > { %2416 = vst.msk [vmem:[%s3775_s18 + $0x58] sm:$0xf] %vm2393_vm3, %v3006_v62  ;;  %2480 = vst.msk [vmem:[%s3775_s18 + $0x158] sm:$0xf] %vm2393_vm3, %v3070_v63  ;;  %v3007_v2 = vpack.c.bf16 %v1776_v0, %v1776_v0  ;;  %v3071_v3 = vpack.c.bf16 %v1840_v1, %v1840_v1 }
 0x16a   : > { %v1338_v4 = vpop.f32.mrb[48].mxu0  ;;  %v1594_v5 = vpop.f32.mrb[48].mxu1 }
 0x16b   : > { %2417 = vst.msk [vmem:[%s3775_s18 + $0x5c] sm:$0xf] %vm2393_vm3, %v3007_v2  ;;  %2481 = vst.msk [vmem:[%s3775_s18 + $0x15c] sm:$0xf] %vm2393_vm3, %v3071_v3  ;;  %v1339_v6 = vadd.f32 %v3759_v61, %v1338_v4  ;;  %v1595_v7 = vadd.f32 %v3759_v61, %v1594_v5  ;;  %v1340_v8 = vpop.f32.mrb[49].mxu0  ;;  %v1596_v9 = vpop.f32.mrb[49].mxu1 }
 0x16c   : > { %v1341_v10 = vpop.f32.mrb[50].mxu0  ;;  %v1597_v11 = vpop.f32.mrb[50].mxu1 }
 0x16d   : > { %v1777_v12 = vmax.f32 %v1339_v6, 0.0  ;;  %v1841_v13 = vmax.f32 %v1595_v7, 0.0  ;;  %v1342_v14 = vadd.f32 %v3759_v61, %v1341_v10  ;;  %v1598_v15 = vadd.f32 %v3759_v61, %v1597_v11  ;;  %v1343_v16 = vpop.f32.mrb[51].mxu0  ;;  %v1599_v17 = vpop.f32.mrb[51].mxu1 }
 0x16f   : > { %v3008_v18 = vpack.c.bf16 %v1777_v12, %v1777_v12  ;;  %v3072_v19 = vpack.c.bf16 %v1841_v13, %v1841_v13  ;;  %v1778_v20 = vmax.f32 %v1342_v14, 0.0  ;;  %v1842_v21 = vmax.f32 %v1598_v15, 0.0 }
 0x171   : > { %2418 = vst.msk [vmem:[%s3775_s18 + $0x60] sm:$0xf] %vm2393_vm3, %v3008_v18  ;;  %2482 = vst.msk [vmem:[%s3775_s18 + $0x160] sm:$0xf] %vm2393_vm3, %v3072_v19  ;;  %v3009_v22 = vpack.c.bf16 %v1778_v20, %v1778_v20  ;;  %v3073_v23 = vpack.c.bf16 %v1842_v21, %v1842_v21 }
 0x172   : > { %v1346_v24 = vpop.f32.mrb[52].mxu0  ;;  %v1602_v25 = vpop.f32.mrb[52].mxu1 }
 0x173   : > { %2419 = vst.msk [vmem:[%s3775_s18 + $0x64] sm:$0xf] %vm2393_vm3, %v3009_v22  ;;  %2483 = vst.msk [vmem:[%s3775_s18 + $0x164] sm:$0xf] %vm2393_vm3, %v3073_v23  ;;  %v1347_v26 = vadd.f32 %v3759_v61, %v1346_v24  ;;  %v1603_v27 = vadd.f32 %v3759_v61, %v1602_v25  ;;  %v1348_v28 = vpop.f32.mrb[53].mxu0  ;;  %v1604_v29 = vpop.f32.mrb[53].mxu1 }
 0x174   : > { %v1349_v30 = vpop.f32.mrb[54].mxu0  ;;  %v1605_v31 = vpop.f32.mrb[54].mxu1 }
 0x175   : > { %v1779_v32 = vmax.f32 %v1347_v26, 0.0  ;;  %v1843_v33 = vmax.f32 %v1603_v27, 0.0  ;;  %v1350_v34 = vadd.f32 %v3759_v61, %v1349_v30  ;;  %v1606_v35 = vadd.f32 %v3759_v61, %v1605_v31  ;;  %v1351_v36 = vpop.f32.mrb[55].mxu0  ;;  %v1607_v37 = vpop.f32.mrb[55].mxu1 }
 0x177   : > { %v3010_v38 = vpack.c.bf16 %v1779_v32, %v1779_v32  ;;  %v3074_v39 = vpack.c.bf16 %v1843_v33, %v1843_v33  ;;  %v1780_v40 = vmax.f32 %v1350_v34, 0.0  ;;  %v1844_v41 = vmax.f32 %v1606_v35, 0.0 }
 0x179   : > { %2420 = vst.msk [vmem:[%s3775_s18 + $0x68] sm:$0xf] %vm2393_vm3, %v3010_v38  ;;  %2484 = vst.msk [vmem:[%s3775_s18 + $0x168] sm:$0xf] %vm2393_vm3, %v3074_v39  ;;  %v3011_v42 = vpack.c.bf16 %v1780_v40, %v1780_v40  ;;  %v3075_v43 = vpack.c.bf16 %v1844_v41, %v1844_v41 }
 0x17a   : > { %v1354_v44 = vpop.f32.mrb[56].mxu0  ;;  %v1610_v45 = vpop.f32.mrb[56].mxu1 }
 0x17b   : > { %2421 = vst.msk [vmem:[%s3775_s18 + $0x6c] sm:$0xf] %vm2393_vm3, %v3011_v42  ;;  %2485 = vst.msk [vmem:[%s3775_s18 + $0x16c] sm:$0xf] %vm2393_vm3, %v3075_v43  ;;  %v1355_v46 = vadd.f32 %v3759_v61, %v1354_v44  ;;  %v1611_v47 = vadd.f32 %v3759_v61, %v1610_v45  ;;  %v1356_v48 = vpop.f32.mrb[57].mxu0  ;;  %v1612_v49 = vpop.f32.mrb[57].mxu1 }
 0x17c   : > { %v1357_v50 = vpop.f32.mrb[58].mxu0  ;;  %v1613_v51 = vpop.f32.mrb[58].mxu1 }
 0x17d   : > { %v1781_v52 = vmax.f32 %v1355_v46, 0.0  ;;  %v1845_v53 = vmax.f32 %v1611_v47, 0.0  ;;  %v1358_v54 = vadd.f32 %v3759_v61, %v1357_v50  ;;  %v1614_v55 = vadd.f32 %v3759_v61, %v1613_v51  ;;  %v1359_v56 = vpop.f32.mrb[59].mxu0  ;;  %v1615_v57 = vpop.f32.mrb[59].mxu1 }
 0x17f   : > { %v3012_v58 = vpack.c.bf16 %v1781_v52, %v1781_v52  ;;  %v3076_v59 = vpack.c.bf16 %v1845_v53, %v1845_v53  ;;  %v1782_v60 = vmax.f32 %v1358_v54, 0.0  ;;  %v1846_v62 = vmax.f32 %v1614_v55, 0.0 }
 0x181   : > { %2422 = vst.msk [vmem:[%s3775_s18 + $0x70] sm:$0xf] %vm2393_vm3, %v3012_v58  ;;  %2486 = vst.msk [vmem:[%s3775_s18 + $0x170] sm:$0xf] %vm2393_vm3, %v3076_v59  ;;  %v3013_v63 = vpack.c.bf16 %v1782_v60, %v1782_v60  ;;  %v3077_v0 = vpack.c.bf16 %v1846_v62, %v1846_v62 }
 0x182   : > { %v1362_v1 = vpop.f32.mrb[60].mxu0  ;;  %v1618_v2 = vpop.f32.mrb[60].mxu1 }
 0x183   : > { %2423 = vst.msk [vmem:[%s3775_s18 + $0x74] sm:$0xf] %vm2393_vm3, %v3013_v63  ;;  %2487 = vst.msk [vmem:[%s3775_s18 + $0x174] sm:$0xf] %vm2393_vm3, %v3077_v0  ;;  %v1363_v3 = vadd.f32 %v3759_v61, %v1362_v1  ;;  %v1619_v4 = vadd.f32 %v3759_v61, %v1618_v2  ;;  %v1364_v5 = vpop.f32.mrb[61].mxu0  ;;  %v1620_v6 = vpop.f32.mrb[61].mxu1 }
 0x184   : > { %v1365_v7 = vpop.f32.mrb[62].mxu0  ;;  %v1621_v8 = vpop.f32.mrb[62].mxu1 }
 0x185   : > { %v1783_v9 = vmax.f32 %v1363_v3, 0.0  ;;  %v1847_v10 = vmax.f32 %v1619_v4, 0.0  ;;  %v1366_v11 = vadd.f32 %v3759_v61, %v1365_v7  ;;  %v1622_v12 = vadd.f32 %v3759_v61, %v1621_v8  ;;  %v1367_v13 = vpop.f32.mrb[63].mxu0  ;;  %v1623_v14 = vpop.f32.mrb[63].mxu1 }
 0x187   : > { %v3014_v15 = vpack.c.bf16 %v1783_v9, %v1783_v9  ;;  %v3078_v16 = vpack.c.bf16 %v1847_v10, %v1847_v10  ;;  %v1784_v17 = vmax.f32 %v1366_v11, 0.0  ;;  %v1848_v18 = vmax.f32 %v1622_v12, 0.0 }
 0x189   : > { %2424 = vst.msk [vmem:[%s3775_s18 + $0x78] sm:$0xf] %vm2393_vm3, %v3014_v15  ;;  %2488 = vst.msk [vmem:[%s3775_s18 + $0x178] sm:$0xf] %vm2393_vm3, %v3078_v16  ;;  %v3015_v19 = vpack.c.bf16 %v1784_v17, %v1784_v17  ;;  %v3079_v20 = vpack.c.bf16 %v1848_v18, %v1848_v18 }
 0x18a   : > { %v1370_v21 = vpop.f32.mrb[64].mxu0  ;;  %v1626_v22 = vpop.f32.mrb[64].mxu1 }
 0x18b   : > { %2425 = vst.msk [vmem:[%s3775_s18 + $0x7c] sm:$0xf] %vm2393_vm3, %v3015_v19  ;;  %2489 = vst.msk [vmem:[%s3775_s18 + $0x17c] sm:$0xf] %vm2393_vm3, %v3079_v20  ;;  %v1371_v23 = vadd.f32 %v3759_v61, %v1370_v21  ;;  %v1627_v24 = vadd.f32 %v3759_v61, %v1626_v22  ;;  %v1372_v25 = vpop.f32.mrb[65].mxu0  ;;  %v1628_v26 = vpop.f32.mrb[65].mxu1 }
 0x18c   : > { %v1373_v27 = vpop.f32.mrb[66].mxu0  ;;  %v1629_v28 = vpop.f32.mrb[66].mxu1 }
 0x18d   : > { %v1785_v29 = vmax.f32 %v1371_v23, 0.0  ;;  %v1849_v30 = vmax.f32 %v1627_v24, 0.0  ;;  %v1374_v31 = vadd.f32 %v3759_v61, %v1373_v27  ;;  %v1630_v32 = vadd.f32 %v3759_v61, %v1629_v28  ;;  %v1375_v33 = vpop.f32.mrb[67].mxu0  ;;  %v1631_v34 = vpop.f32.mrb[67].mxu1 }
 0x18f   : > { %v3016_v35 = vpack.c.bf16 %v1785_v29, %v1785_v29  ;;  %v3080_v36 = vpack.c.bf16 %v1849_v30, %v1849_v30  ;;  %v1786_v37 = vmax.f32 %v1374_v31, 0.0  ;;  %v1850_v38 = vmax.f32 %v1630_v32, 0.0 }
 0x191   : > { %2426 = vst.msk [vmem:[%s3775_s18 + $0x80] sm:$0xf] %vm2393_vm3, %v3016_v35  ;;  %2490 = vst.msk [vmem:[%s3775_s18 + $0x180] sm:$0xf] %vm2393_vm3, %v3080_v36  ;;  %v3017_v39 = vpack.c.bf16 %v1786_v37, %v1786_v37  ;;  %v3081_v40 = vpack.c.bf16 %v1850_v38, %v1850_v38 }
 0x192   : > { %v1378_v41 = vpop.f32.mrb[68].mxu0  ;;  %v1634_v42 = vpop.f32.mrb[68].mxu1 }
 0x193   : > { %2427 = vst.msk [vmem:[%s3775_s18 + $0x84] sm:$0xf] %vm2393_vm3, %v3017_v39  ;;  %2491 = vst.msk [vmem:[%s3775_s18 + $0x184] sm:$0xf] %vm2393_vm3, %v3081_v40  ;;  %v1379_v43 = vadd.f32 %v3759_v61, %v1378_v41  ;;  %v1635_v44 = vadd.f32 %v3759_v61, %v1634_v42  ;;  %v1380_v45 = vpop.f32.mrb[69].mxu0  ;;  %v1636_v46 = vpop.f32.mrb[69].mxu1 }
 0x194   : > { %v1381_v47 = vpop.f32.mrb[70].mxu0  ;;  %v1637_v48 = vpop.f32.mrb[70].mxu1 }
 0x195   : > { %v1787_v49 = vmax.f32 %v1379_v43, 0.0  ;;  %v1851_v50 = vmax.f32 %v1635_v44, 0.0  ;;  %v1382_v51 = vadd.f32 %v3759_v61, %v1381_v47  ;;  %v1638_v52 = vadd.f32 %v3759_v61, %v1637_v48  ;;  %v1383_v53 = vpop.f32.mrb[71].mxu0  ;;  %v1639_v54 = vpop.f32.mrb[71].mxu1 }
 0x197   : > { %v3018_v55 = vpack.c.bf16 %v1787_v49, %v1787_v49  ;;  %v3082_v56 = vpack.c.bf16 %v1851_v50, %v1851_v50  ;;  %v1788_v57 = vmax.f32 %v1382_v51, 0.0  ;;  %v1852_v58 = vmax.f32 %v1638_v52, 0.0 }
 0x199   : > { %2428 = vst.msk [vmem:[%s3775_s18 + $0x88] sm:$0xf] %vm2393_vm3, %v3018_v55  ;;  %2492 = vst.msk [vmem:[%s3775_s18 + $0x188] sm:$0xf] %vm2393_vm3, %v3082_v56  ;;  %v3019_v59 = vpack.c.bf16 %v1788_v57, %v1788_v57  ;;  %v3083_v60 = vpack.c.bf16 %v1852_v58, %v1852_v58 }
 0x19a   : > { %v1386_v62 = vpop.f32.mrb[72].mxu0  ;;  %v1642_v63 = vpop.f32.mrb[72].mxu1 }
 0x19b   : > { %2429 = vst.msk [vmem:[%s3775_s18 + $0x8c] sm:$0xf] %vm2393_vm3, %v3019_v59  ;;  %2493 = vst.msk [vmem:[%s3775_s18 + $0x18c] sm:$0xf] %vm2393_vm3, %v3083_v60  ;;  %v1387_v0 = vadd.f32 %v3759_v61, %v1386_v62  ;;  %v1643_v1 = vadd.f32 %v3759_v61, %v1642_v63  ;;  %v1388_v2 = vpop.f32.mrb[73].mxu0  ;;  %v1644_v3 = vpop.f32.mrb[73].mxu1 }
 0x19c   : > { %v1389_v4 = vpop.f32.mrb[74].mxu0  ;;  %v1645_v5 = vpop.f32.mrb[74].mxu1 }
 0x19d   : > { %v1789_v6 = vmax.f32 %v1387_v0, 0.0  ;;  %v1853_v7 = vmax.f32 %v1643_v1, 0.0  ;;  %v1390_v8 = vadd.f32 %v3759_v61, %v1389_v4  ;;  %v1646_v9 = vadd.f32 %v3759_v61, %v1645_v5  ;;  %v1391_v10 = vpop.f32.mrb[75].mxu0  ;;  %v1647_v11 = vpop.f32.mrb[75].mxu1 }
 0x19f   : > { %v3020_v12 = vpack.c.bf16 %v1789_v6, %v1789_v6  ;;  %v3084_v13 = vpack.c.bf16 %v1853_v7, %v1853_v7  ;;  %v1790_v14 = vmax.f32 %v1390_v8, 0.0  ;;  %v1854_v15 = vmax.f32 %v1646_v9, 0.0 }
 0x1a1   : > { %2430 = vst.msk [vmem:[%s3775_s18 + $0x90] sm:$0xf] %vm2393_vm3, %v3020_v12  ;;  %2494 = vst.msk [vmem:[%s3775_s18 + $0x190] sm:$0xf] %vm2393_vm3, %v3084_v13  ;;  %v3021_v16 = vpack.c.bf16 %v1790_v14, %v1790_v14  ;;  %v3085_v17 = vpack.c.bf16 %v1854_v15, %v1854_v15 }
 0x1a2   : > { %v1394_v18 = vpop.f32.mrb[76].mxu0  ;;  %v1650_v19 = vpop.f32.mrb[76].mxu1 }
 0x1a3   : > { %2431 = vst.msk [vmem:[%s3775_s18 + $0x94] sm:$0xf] %vm2393_vm3, %v3021_v16  ;;  %2495 = vst.msk [vmem:[%s3775_s18 + $0x194] sm:$0xf] %vm2393_vm3, %v3085_v17  ;;  %v1395_v20 = vadd.f32 %v3759_v61, %v1394_v18  ;;  %v1651_v21 = vadd.f32 %v3759_v61, %v1650_v19  ;;  %v1396_v22 = vpop.f32.mrb[77].mxu0  ;;  %v1652_v23 = vpop.f32.mrb[77].mxu1 }
 0x1a4   : > { %v1397_v24 = vpop.f32.mrb[78].mxu0  ;;  %v1653_v25 = vpop.f32.mrb[78].mxu1 }
 0x1a5   : > { %v1791_v26 = vmax.f32 %v1395_v20, 0.0  ;;  %v1855_v27 = vmax.f32 %v1651_v21, 0.0  ;;  %v1398_v28 = vadd.f32 %v3759_v61, %v1397_v24  ;;  %v1654_v29 = vadd.f32 %v3759_v61, %v1653_v25  ;;  %v1399_v30 = vpop.f32.mrb[79].mxu0  ;;  %v1655_v31 = vpop.f32.mrb[79].mxu1  ;;  %v4036_v61 = vld [vmem:[%s4241_s2] ss:$0 sm:$0xff] }
 0x1a7   : > { %v3022_v32 = vpack.c.bf16 %v1791_v26, %v1791_v26  ;;  %v3086_v33 = vpack.c.bf16 %v1855_v27, %v1855_v27  ;;  %v1792_v34 = vmax.f32 %v1398_v28, 0.0  ;;  %v1856_v35 = vmax.f32 %v1654_v29, 0.0 }
 0x1a9   : > { %2432 = vst.msk [vmem:[%s3775_s18 + $0x98] sm:$0xf] %vm2393_vm3, %v3022_v32  ;;  %2496 = vst.msk [vmem:[%s3775_s18 + $0x198] sm:$0xf] %vm2393_vm3, %v3086_v33  ;;  %v3023_v36 = vpack.c.bf16 %v1792_v34, %v1792_v34  ;;  %v3087_v37 = vpack.c.bf16 %v1856_v35, %v1856_v35 }
 0x1aa   : > { %v1402_v38 = vpop.f32.mrb[80].mxu0  ;;  %v1658_v39 = vpop.f32.mrb[80].mxu1 }
 0x1ab   : > { %2433 = vst.msk [vmem:[%s3775_s18 + $0x9c] sm:$0xf] %vm2393_vm3, %v3023_v36  ;;  %2497 = vst.msk [vmem:[%s3775_s18 + $0x19c] sm:$0xf] %vm2393_vm3, %v3087_v37  ;;  %v1403_v40 = vadd.f32 %v4036_v61, %v1402_v38  ;;  %v1659_v41 = vadd.f32 %v4036_v61, %v1658_v39  ;;  %v1404_v42 = vpop.f32.mrb[81].mxu0  ;;  %v1660_v43 = vpop.f32.mrb[81].mxu1 }
 0x1ac   : > { %v1405_v44 = vpop.f32.mrb[82].mxu0  ;;  %v1661_v45 = vpop.f32.mrb[82].mxu1 }
 0x1ad   : > { %v1793_v46 = vmax.f32 %v1403_v40, 0.0  ;;  %v1857_v47 = vmax.f32 %v1659_v41, 0.0  ;;  %v1406_v48 = vadd.f32 %v4036_v61, %v1405_v44  ;;  %v1662_v49 = vadd.f32 %v4036_v61, %v1661_v45  ;;  %v1407_v50 = vpop.f32.mrb[83].mxu0  ;;  %v1663_v51 = vpop.f32.mrb[83].mxu1 }
 0x1af   : > { %v3024_v52 = vpack.c.bf16 %v1793_v46, %v1793_v46  ;;  %v3088_v53 = vpack.c.bf16 %v1857_v47, %v1857_v47  ;;  %v1794_v54 = vmax.f32 %v1406_v48, 0.0  ;;  %v1858_v55 = vmax.f32 %v1662_v49, 0.0 }
 0x1b1   : > { %2434 = vst.msk [vmem:[%s3775_s18 + $0xa0] sm:$0xf] %vm2393_vm3, %v3024_v52  ;;  %2498 = vst.msk [vmem:[%s3775_s18 + $0x1a0] sm:$0xf] %vm2393_vm3, %v3088_v53  ;;  %v3025_v56 = vpack.c.bf16 %v1794_v54, %v1794_v54  ;;  %v3089_v57 = vpack.c.bf16 %v1858_v55, %v1858_v55 }
 0x1b2   : > { %v1410_v58 = vpop.f32.mrb[84].mxu0  ;;  %v1666_v59 = vpop.f32.mrb[84].mxu1 }
 0x1b3   : > { %2435 = vst.msk [vmem:[%s3775_s18 + $0xa4] sm:$0xf] %vm2393_vm3, %v3025_v56  ;;  %2499 = vst.msk [vmem:[%s3775_s18 + $0x1a4] sm:$0xf] %vm2393_vm3, %v3089_v57  ;;  %v1411_v60 = vadd.f32 %v4036_v61, %v1410_v58  ;;  %v1667_v62 = vadd.f32 %v4036_v61, %v1666_v59  ;;  %v1412_v63 = vpop.f32.mrb[85].mxu0  ;;  %v1668_v0 = vpop.f32.mrb[85].mxu1 }
 0x1b4   : > { %v1413_v1 = vpop.f32.mrb[86].mxu0  ;;  %v1669_v2 = vpop.f32.mrb[86].mxu1 }
 0x1b5   : > { %v1795_v3 = vmax.f32 %v1411_v60, 0.0  ;;  %v1859_v4 = vmax.f32 %v1667_v62, 0.0  ;;  %v1414_v5 = vadd.f32 %v4036_v61, %v1413_v1  ;;  %v1670_v6 = vadd.f32 %v4036_v61, %v1669_v2  ;;  %v1415_v7 = vpop.f32.mrb[87].mxu0  ;;  %v1671_v8 = vpop.f32.mrb[87].mxu1 }
 0x1b7   : > { %v3026_v9 = vpack.c.bf16 %v1795_v3, %v1795_v3  ;;  %v3090_v10 = vpack.c.bf16 %v1859_v4, %v1859_v4  ;;  %v1796_v11 = vmax.f32 %v1414_v5, 0.0  ;;  %v1860_v12 = vmax.f32 %v1670_v6, 0.0 }
 0x1b9   : > { %2436 = vst.msk [vmem:[%s3775_s18 + $0xa8] sm:$0xf] %vm2393_vm3, %v3026_v9  ;;  %2500 = vst.msk [vmem:[%s3775_s18 + $0x1a8] sm:$0xf] %vm2393_vm3, %v3090_v10  ;;  %v3027_v13 = vpack.c.bf16 %v1796_v11, %v1796_v11  ;;  %v3091_v14 = vpack.c.bf16 %v1860_v12, %v1860_v12 }
 0x1ba   : > { %v1418_v15 = vpop.f32.mrb[88].mxu0  ;;  %v1674_v16 = vpop.f32.mrb[88].mxu1 }
 0x1bb   : > { %2437 = vst.msk [vmem:[%s3775_s18 + $0xac] sm:$0xf] %vm2393_vm3, %v3027_v13  ;;  %2501 = vst.msk [vmem:[%s3775_s18 + $0x1ac] sm:$0xf] %vm2393_vm3, %v3091_v14  ;;  %v1419_v17 = vadd.f32 %v4036_v61, %v1418_v15  ;;  %v1675_v18 = vadd.f32 %v4036_v61, %v1674_v16  ;;  %v1420_v19 = vpop.f32.mrb[89].mxu0  ;;  %v1676_v20 = vpop.f32.mrb[89].mxu1 }
 0x1bc   : > { %v1421_v21 = vpop.f32.mrb[90].mxu0  ;;  %v1677_v22 = vpop.f32.mrb[90].mxu1 }
 0x1bd   : > { %v1797_v23 = vmax.f32 %v1419_v17, 0.0  ;;  %v1861_v24 = vmax.f32 %v1675_v18, 0.0  ;;  %v1422_v25 = vadd.f32 %v4036_v61, %v1421_v21  ;;  %v1678_v26 = vadd.f32 %v4036_v61, %v1677_v22  ;;  %v1423_v27 = vpop.f32.mrb[91].mxu0  ;;  %v1679_v28 = vpop.f32.mrb[91].mxu1 }
 0x1bf   : > { %v3028_v29 = vpack.c.bf16 %v1797_v23, %v1797_v23  ;;  %v3092_v30 = vpack.c.bf16 %v1861_v24, %v1861_v24  ;;  %v1798_v31 = vmax.f32 %v1422_v25, 0.0  ;;  %v1862_v32 = vmax.f32 %v1678_v26, 0.0 }
 0x1c1   : > { %2438 = vst.msk [vmem:[%s3775_s18 + $0xb0] sm:$0xf] %vm2393_vm3, %v3028_v29  ;;  %2502 = vst.msk [vmem:[%s3775_s18 + $0x1b0] sm:$0xf] %vm2393_vm3, %v3092_v30  ;;  %v3029_v33 = vpack.c.bf16 %v1798_v31, %v1798_v31  ;;  %v3093_v34 = vpack.c.bf16 %v1862_v32, %v1862_v32 }
 0x1c2   : > { %v1426_v35 = vpop.f32.mrb[92].mxu0  ;;  %v1682_v36 = vpop.f32.mrb[92].mxu1 }
 0x1c3   : > { %2439 = vst.msk [vmem:[%s3775_s18 + $0xb4] sm:$0xf] %vm2393_vm3, %v3029_v33  ;;  %2503 = vst.msk [vmem:[%s3775_s18 + $0x1b4] sm:$0xf] %vm2393_vm3, %v3093_v34  ;;  %v1427_v37 = vadd.f32 %v4036_v61, %v1426_v35  ;;  %v1683_v38 = vadd.f32 %v4036_v61, %v1682_v36  ;;  %v1428_v39 = vpop.f32.mrb[93].mxu0  ;;  %v1684_v40 = vpop.f32.mrb[93].mxu1 }
 0x1c4   : > { %v1429_v41 = vpop.f32.mrb[94].mxu0  ;;  %v1685_v42 = vpop.f32.mrb[94].mxu1 }
 0x1c5   : > { %v1799_v43 = vmax.f32 %v1427_v37, 0.0  ;;  %v1863_v44 = vmax.f32 %v1683_v38, 0.0  ;;  %v1430_v45 = vadd.f32 %v4036_v61, %v1429_v41  ;;  %v1686_v46 = vadd.f32 %v4036_v61, %v1685_v42  ;;  %v1431_v47 = vpop.f32.mrb[95].mxu0  ;;  %v1687_v48 = vpop.f32.mrb[95].mxu1 }
 0x1c7   : > { %v3030_v49 = vpack.c.bf16 %v1799_v43, %v1799_v43  ;;  %v3094_v50 = vpack.c.bf16 %v1863_v44, %v1863_v44  ;;  %v1800_v51 = vmax.f32 %v1430_v45, 0.0  ;;  %v1864_v52 = vmax.f32 %v1686_v46, 0.0 }
 0x1c9   : > { %2440 = vst.msk [vmem:[%s3775_s18 + $0xb8] sm:$0xf] %vm2393_vm3, %v3030_v49  ;;  %2504 = vst.msk [vmem:[%s3775_s18 + $0x1b8] sm:$0xf] %vm2393_vm3, %v3094_v50  ;;  %v3031_v53 = vpack.c.bf16 %v1800_v51, %v1800_v51  ;;  %v3095_v54 = vpack.c.bf16 %v1864_v52, %v1864_v52 }
 0x1ca   : > { %v1434_v55 = vpop.f32.mrb[96].mxu0  ;;  %v1690_v56 = vpop.f32.mrb[96].mxu1 }
 0x1cb   : > { %2441 = vst.msk [vmem:[%s3775_s18 + $0xbc] sm:$0xf] %vm2393_vm3, %v3031_v53  ;;  %2505 = vst.msk [vmem:[%s3775_s18 + $0x1bc] sm:$0xf] %vm2393_vm3, %v3095_v54  ;;  %v1435_v57 = vadd.f32 %v4036_v61, %v1434_v55  ;;  %v1691_v58 = vadd.f32 %v4036_v61, %v1690_v56  ;;  %v1436_v59 = vpop.f32.mrb[97].mxu0  ;;  %v1692_v60 = vpop.f32.mrb[97].mxu1 }
 0x1cc   : > { %v1437_v62 = vpop.f32.mrb[98].mxu0  ;;  %v1693_v63 = vpop.f32.mrb[98].mxu1 }
 0x1cd   : > { %v1801_v0 = vmax.f32 %v1435_v57, 0.0  ;;  %v1865_v1 = vmax.f32 %v1691_v58, 0.0  ;;  %v1438_v2 = vadd.f32 %v4036_v61, %v1437_v62  ;;  %v1694_v3 = vadd.f32 %v4036_v61, %v1693_v63  ;;  %v1439_v4 = vpop.f32.mrb[99].mxu0  ;;  %v1695_v5 = vpop.f32.mrb[99].mxu1 }
 0x1cf   : > { %v3032_v6 = vpack.c.bf16 %v1801_v0, %v1801_v0  ;;  %v3096_v7 = vpack.c.bf16 %v1865_v1, %v1865_v1  ;;  %v1802_v8 = vmax.f32 %v1438_v2, 0.0  ;;  %v1866_v9 = vmax.f32 %v1694_v3, 0.0 }
 0x1d1   : > { %2442 = vst.msk [vmem:[%s3775_s18 + $0xc0] sm:$0xf] %vm2393_vm3, %v3032_v6  ;;  %2506 = vst.msk [vmem:[%s3775_s18 + $0x1c0] sm:$0xf] %vm2393_vm3, %v3096_v7  ;;  %v3033_v10 = vpack.c.bf16 %v1802_v8, %v1802_v8  ;;  %v3097_v11 = vpack.c.bf16 %v1866_v9, %v1866_v9 }
 0x1d2   : > { %v1442_v12 = vpop.f32.mrb[100].mxu0  ;;  %v1698_v13 = vpop.f32.mrb[100].mxu1 }
 0x1d3   : > { %2443 = vst.msk [vmem:[%s3775_s18 + $0xc4] sm:$0xf] %vm2393_vm3, %v3033_v10  ;;  %2507 = vst.msk [vmem:[%s3775_s18 + $0x1c4] sm:$0xf] %vm2393_vm3, %v3097_v11  ;;  %v1443_v14 = vadd.f32 %v4036_v61, %v1442_v12  ;;  %v1699_v15 = vadd.f32 %v4036_v61, %v1698_v13  ;;  %v1444_v16 = vpop.f32.mrb[101].mxu0  ;;  %v1700_v17 = vpop.f32.mrb[101].mxu1 }
 0x1d4   : > { %v1445_v18 = vpop.f32.mrb[102].mxu0  ;;  %v1701_v19 = vpop.f32.mrb[102].mxu1 }
 0x1d5   : > { %v1803_v20 = vmax.f32 %v1443_v14, 0.0  ;;  %v1867_v21 = vmax.f32 %v1699_v15, 0.0  ;;  %v1446_v22 = vadd.f32 %v4036_v61, %v1445_v18  ;;  %v1702_v23 = vadd.f32 %v4036_v61, %v1701_v19  ;;  %v1447_v24 = vpop.f32.mrb[103].mxu0  ;;  %v1703_v25 = vpop.f32.mrb[103].mxu1 }
 0x1d7   : > { %v3034_v26 = vpack.c.bf16 %v1803_v20, %v1803_v20  ;;  %v3098_v27 = vpack.c.bf16 %v1867_v21, %v1867_v21  ;;  %v1804_v28 = vmax.f32 %v1446_v22, 0.0  ;;  %v1868_v29 = vmax.f32 %v1702_v23, 0.0 }
 0x1d9   : > { %2444 = vst.msk [vmem:[%s3775_s18 + $0xc8] sm:$0xf] %vm2393_vm3, %v3034_v26  ;;  %2508 = vst.msk [vmem:[%s3775_s18 + $0x1c8] sm:$0xf] %vm2393_vm3, %v3098_v27  ;;  %v3035_v30 = vpack.c.bf16 %v1804_v28, %v1804_v28  ;;  %v3099_v31 = vpack.c.bf16 %v1868_v29, %v1868_v29 }
 0x1da   : > { %v1450_v32 = vpop.f32.mrb[104].mxu0  ;;  %v1706_v33 = vpop.f32.mrb[104].mxu1 }
 0x1db   : > { %2445 = vst.msk [vmem:[%s3775_s18 + $0xcc] sm:$0xf] %vm2393_vm3, %v3035_v30  ;;  %2509 = vst.msk [vmem:[%s3775_s18 + $0x1cc] sm:$0xf] %vm2393_vm3, %v3099_v31  ;;  %v1451_v34 = vadd.f32 %v4036_v61, %v1450_v32  ;;  %v1707_v35 = vadd.f32 %v4036_v61, %v1706_v33  ;;  %v1452_v36 = vpop.f32.mrb[105].mxu0  ;;  %v1708_v37 = vpop.f32.mrb[105].mxu1 }
 0x1dc   : > { %v1453_v38 = vpop.f32.mrb[106].mxu0  ;;  %v1709_v39 = vpop.f32.mrb[106].mxu1 }
 0x1dd   : > { %v1805_v40 = vmax.f32 %v1451_v34, 0.0  ;;  %v1869_v41 = vmax.f32 %v1707_v35, 0.0  ;;  %v1454_v42 = vadd.f32 %v4036_v61, %v1453_v38  ;;  %v1710_v43 = vadd.f32 %v4036_v61, %v1709_v39  ;;  %v1455_v44 = vpop.f32.mrb[107].mxu0  ;;  %v1711_v45 = vpop.f32.mrb[107].mxu1 }
 0x1df   : > { %v3036_v46 = vpack.c.bf16 %v1805_v40, %v1805_v40  ;;  %v3100_v47 = vpack.c.bf16 %v1869_v41, %v1869_v41  ;;  %v1806_v48 = vmax.f32 %v1454_v42, 0.0  ;;  %v1870_v49 = vmax.f32 %v1710_v43, 0.0 }
 0x1e1   : > { %2446 = vst.msk [vmem:[%s3775_s18 + $0xd0] sm:$0xf] %vm2393_vm3, %v3036_v46  ;;  %2510 = vst.msk [vmem:[%s3775_s18 + $0x1d0] sm:$0xf] %vm2393_vm3, %v3100_v47  ;;  %v3037_v50 = vpack.c.bf16 %v1806_v48, %v1806_v48  ;;  %v3101_v51 = vpack.c.bf16 %v1870_v49, %v1870_v49 }
 0x1e2   : > { %v1458_v52 = vpop.f32.mrb[108].mxu0  ;;  %v1714_v53 = vpop.f32.mrb[108].mxu1 }
 0x1e3   : > { %2447 = vst.msk [vmem:[%s3775_s18 + $0xd4] sm:$0xf] %vm2393_vm3, %v3037_v50  ;;  %2511 = vst.msk [vmem:[%s3775_s18 + $0x1d4] sm:$0xf] %vm2393_vm3, %v3101_v51  ;;  %v1459_v54 = vadd.f32 %v4036_v61, %v1458_v52  ;;  %v1715_v55 = vadd.f32 %v4036_v61, %v1714_v53  ;;  %v1460_v56 = vpop.f32.mrb[109].mxu0  ;;  %v1716_v57 = vpop.f32.mrb[109].mxu1 }
 0x1e4   : > { %v1461_v58 = vpop.f32.mrb[110].mxu0  ;;  %v1717_v59 = vpop.f32.mrb[110].mxu1 }
 0x1e5   : > { %v1807_v60 = vmax.f32 %v1459_v54, 0.0  ;;  %v1871_v62 = vmax.f32 %v1715_v55, 0.0  ;;  %v1462_v63 = vadd.f32 %v4036_v61, %v1461_v58  ;;  %v1718_v0 = vadd.f32 %v4036_v61, %v1717_v59  ;;  %v1463_v1 = vpop.f32.mrb[111].mxu0  ;;  %v1719_v2 = vpop.f32.mrb[111].mxu1 }
 0x1e7   : > { %v3038_v3 = vpack.c.bf16 %v1807_v60, %v1807_v60  ;;  %v3102_v4 = vpack.c.bf16 %v1871_v62, %v1871_v62  ;;  %v1808_v5 = vmax.f32 %v1462_v63, 0.0  ;;  %v1872_v6 = vmax.f32 %v1718_v0, 0.0 }
 0x1e9   : > { %2448 = vst.msk [vmem:[%s3775_s18 + $0xd8] sm:$0xf] %vm2393_vm3, %v3038_v3  ;;  %2512 = vst.msk [vmem:[%s3775_s18 + $0x1d8] sm:$0xf] %vm2393_vm3, %v3102_v4  ;;  %v3039_v7 = vpack.c.bf16 %v1808_v5, %v1808_v5  ;;  %v3103_v8 = vpack.c.bf16 %v1872_v6, %v1872_v6 }
 0x1ea   : > { %v1466_v9 = vpop.f32.mrb[112].mxu0  ;;  %v1722_v10 = vpop.f32.mrb[112].mxu1 }
 0x1eb   : > { %2449 = vst.msk [vmem:[%s3775_s18 + $0xdc] sm:$0xf] %vm2393_vm3, %v3039_v7  ;;  %2513 = vst.msk [vmem:[%s3775_s18 + $0x1dc] sm:$0xf] %vm2393_vm3, %v3103_v8  ;;  %v1467_v11 = vadd.f32 %v4036_v61, %v1466_v9  ;;  %v1723_v12 = vadd.f32 %v4036_v61, %v1722_v10  ;;  %v1468_v13 = vpop.f32.mrb[113].mxu0  ;;  %v1724_v14 = vpop.f32.mrb[113].mxu1 }
 0x1ec   : > { %v1469_v15 = vpop.f32.mrb[114].mxu0  ;;  %v1725_v16 = vpop.f32.mrb[114].mxu1 }
 0x1ed   : > { %v1809_v17 = vmax.f32 %v1467_v11, 0.0  ;;  %v1873_v18 = vmax.f32 %v1723_v12, 0.0  ;;  %v1470_v19 = vadd.f32 %v4036_v61, %v1469_v15  ;;  %v1726_v20 = vadd.f32 %v4036_v61, %v1725_v16  ;;  %v1471_v21 = vpop.f32.mrb[115].mxu0  ;;  %v1727_v22 = vpop.f32.mrb[115].mxu1 }
 0x1ef   : > { %v3040_v23 = vpack.c.bf16 %v1809_v17, %v1809_v17  ;;  %v3104_v24 = vpack.c.bf16 %v1873_v18, %v1873_v18  ;;  %v1810_v25 = vmax.f32 %v1470_v19, 0.0  ;;  %v1874_v26 = vmax.f32 %v1726_v20, 0.0 }
 0x1f1   : > { %2450 = vst.msk [vmem:[%s3775_s18 + $0xe0] sm:$0xf] %vm2393_vm3, %v3040_v23  ;;  %2514 = vst.msk [vmem:[%s3775_s18 + $0x1e0] sm:$0xf] %vm2393_vm3, %v3104_v24  ;;  %v3041_v27 = vpack.c.bf16 %v1810_v25, %v1810_v25  ;;  %v3105_v28 = vpack.c.bf16 %v1874_v26, %v1874_v26 }
 0x1f2   : > { %v1474_v29 = vpop.f32.mrb[116].mxu0  ;;  %v1730_v30 = vpop.f32.mrb[116].mxu1 }
 0x1f3   : > { %2451 = vst.msk [vmem:[%s3775_s18 + $0xe4] sm:$0xf] %vm2393_vm3, %v3041_v27  ;;  %2515 = vst.msk [vmem:[%s3775_s18 + $0x1e4] sm:$0xf] %vm2393_vm3, %v3105_v28  ;;  %v1475_v31 = vadd.f32 %v4036_v61, %v1474_v29  ;;  %v1731_v32 = vadd.f32 %v4036_v61, %v1730_v30  ;;  %v1476_v33 = vpop.f32.mrb[117].mxu0  ;;  %v1732_v34 = vpop.f32.mrb[117].mxu1 }
 0x1f4   : > { %v1477_v35 = vpop.f32.mrb[118].mxu0  ;;  %v1733_v36 = vpop.f32.mrb[118].mxu1 }
 0x1f5   : > { %v1811_v37 = vmax.f32 %v1475_v31, 0.0  ;;  %v1875_v38 = vmax.f32 %v1731_v32, 0.0  ;;  %v1478_v39 = vadd.f32 %v4036_v61, %v1477_v35  ;;  %v1734_v40 = vadd.f32 %v4036_v61, %v1733_v36  ;;  %v1479_v41 = vpop.f32.mrb[119].mxu0  ;;  %v1735_v42 = vpop.f32.mrb[119].mxu1 }
 0x1f7   : > { %v3042_v43 = vpack.c.bf16 %v1811_v37, %v1811_v37  ;;  %v3106_v44 = vpack.c.bf16 %v1875_v38, %v1875_v38  ;;  %v1812_v45 = vmax.f32 %v1478_v39, 0.0  ;;  %v1876_v46 = vmax.f32 %v1734_v40, 0.0 }
 0x1f9   : > { %2452 = vst.msk [vmem:[%s3775_s18 + $0xe8] sm:$0xf] %vm2393_vm3, %v3042_v43  ;;  %2516 = vst.msk [vmem:[%s3775_s18 + $0x1e8] sm:$0xf] %vm2393_vm3, %v3106_v44  ;;  %v3043_v47 = vpack.c.bf16 %v1812_v45, %v1812_v45  ;;  %v3107_v48 = vpack.c.bf16 %v1876_v46, %v1876_v46 }
 0x1fa   : > { %v1482_v49 = vpop.f32.mrb[120].mxu0  ;;  %v1738_v50 = vpop.f32.mrb[120].mxu1 }
 0x1fb   : > { %2453 = vst.msk [vmem:[%s3775_s18 + $0xec] sm:$0xf] %vm2393_vm3, %v3043_v47  ;;  %2517 = vst.msk [vmem:[%s3775_s18 + $0x1ec] sm:$0xf] %vm2393_vm3, %v3107_v48  ;;  %v1483_v51 = vadd.f32 %v4036_v61, %v1482_v49  ;;  %v1739_v52 = vadd.f32 %v4036_v61, %v1738_v50  ;;  %v1484_v53 = vpop.f32.mrb[121].mxu0  ;;  %v1740_v54 = vpop.f32.mrb[121].mxu1 }
 0x1fc   : > { %v1485_v55 = vpop.f32.mrb[122].mxu0  ;;  %v1741_v56 = vpop.f32.mrb[122].mxu1 }
 0x1fd   : > { %v1813_v57 = vmax.f32 %v1483_v51, 0.0  ;;  %v1877_v58 = vmax.f32 %v1739_v52, 0.0  ;;  %v1486_v59 = vadd.f32 %v4036_v61, %v1485_v55  ;;  %v1742_v60 = vadd.f32 %v4036_v61, %v1741_v56  ;;  %v1487_v62 = vpop.f32.mrb[123].mxu0  ;;  %v1743_v63 = vpop.f32.mrb[123].mxu1 }
 0x1ff   : > { %v3044_v0 = vpack.c.bf16 %v1813_v57, %v1813_v57  ;;  %v3108_v1 = vpack.c.bf16 %v1877_v58, %v1877_v58  ;;  %v1814_v2 = vmax.f32 %v1486_v59, 0.0  ;;  %v1878_v3 = vmax.f32 %v1742_v60, 0.0 }
 0x201   : > { %2454 = vst.msk [vmem:[%s3775_s18 + $0xf0] sm:$0xf] %vm2393_vm3, %v3044_v0  ;;  %2518 = vst.msk [vmem:[%s3775_s18 + $0x1f0] sm:$0xf] %vm2393_vm3, %v3108_v1  ;;  %v3045_v4 = vpack.c.bf16 %v1814_v2, %v1814_v2  ;;  %v3109_v5 = vpack.c.bf16 %v1878_v3, %v1878_v3 }
 0x202   : > { %v1490_v6 = vpop.f32.mrb[124].mxu0  ;;  %v1746_v7 = vpop.f32.mrb[124].mxu1 }
 0x203   : > { %2455 = vst.msk [vmem:[%s3775_s18 + $0xf4] sm:$0xf] %vm2393_vm3, %v3045_v4  ;;  %2519 = vst.msk [vmem:[%s3775_s18 + $0x1f4] sm:$0xf] %vm2393_vm3, %v3109_v5  ;;  %v1491_v8 = vadd.f32 %v4036_v61, %v1490_v6  ;;  %v1747_v9 = vadd.f32 %v4036_v61, %v1746_v7  ;;  %v1492_v10 = vpop.f32.mrb[125].mxu0  ;;  %v1748_v11 = vpop.f32.mrb[125].mxu1 }
 0x204   : > { %v1493_v12 = vpop.f32.mrb[126].mxu0  ;;  %v1749_v13 = vpop.f32.mrb[126].mxu1 }
 0x205   : > { %v1815_v14 = vmax.f32 %v1491_v8, 0.0  ;;  %v1879_v15 = vmax.f32 %v1747_v9, 0.0  ;;  %v1494_v16 = vadd.f32 %v4036_v61, %v1493_v12  ;;  %v1750_v17 = vadd.f32 %v4036_v61, %v1749_v13  ;;  %v1495_v18 = vpop.f32.mrb[127].mxu0  ;;  %v1751_v19 = vpop.f32.mrb[127].mxu1 }
 0x207   : > { %v3046_v20 = vpack.c.bf16 %v1815_v14, %v1815_v14  ;;  %v3110_v21 = vpack.c.bf16 %v1879_v15, %v1879_v15  ;;  %v1816_v22 = vmax.f32 %v1494_v16, 0.0  ;;  %v1880_v23 = vmax.f32 %v1750_v17, 0.0 }
 0x209   : > { %2456 = vst.msk [vmem:[%s3775_s18 + $0xf8] sm:$0xf] %vm2393_vm3, %v3046_v20  ;;  %2520 = vst.msk [vmem:[%s3775_s18 + $0x1f8] sm:$0xf] %vm2393_vm3, %v3110_v21  ;;  %v3047_v61 = vpack.c.bf16 %v1816_v22, %v1816_v22  ;;  %v3111_v24 = vpack.c.bf16 %v1880_v23, %v1880_v23 }
 0x20b   : > { %2457 = vst.msk [vmem:[%s3775_s18 + $0xfc] sm:$0xf] %vm2393_vm3, %v3047_v61  ;;  %2521 = vst.msk [vmem:[%s3775_s18 + $0x1fc] sm:$0xf] %vm2393_vm3, %v3111_v24 }
 0x20c   : > { %3408 = shalt.err (!%p3405_p5)
}
 0x20d   : > { %s3409_s6 = scalar_lea.hbm %s4179_s28, 8192  ;;  %s3413_s9 = scalar_lea.hbm %s4242_s3, 16384 }
 0x20e   : > { %p3410_p6 = scmp.ne.s32.totalorder %s4179_s28, %s3409_s6  ;;  %p3414_p10 = scmp.lt.u32.totalorder %s4179_s28, %s4242_s3 }
 0x20f   : > { %p3415_p11 = scmp.lt.u32.totalorder %s3413_s9, %s3409_s6  ;;  %p3417_p13 = scmp.lt.u32.totalorder %s3409_s6, %s4179_s28 }
 0x210   : > { %p3411_p7 = pnand %p3410_p6, %p3540_p4 }
 0x211   : > { %p3416_p12 = por %p3415_p11, %p3414_p10 }
 0x212   : > { %p3412_p9 = pneg %p3411_p7 }
 0x213   : > { %p3418_p0 = por %p3417_p13, %p3416_p12 }
 0x215   : > { %p3419_p1 = pnand %p3418_p0, %p3412_p9 }
 0x217   : > { %3422 = shalt.err (!%p3419_p1)
}
 0x218   : > { %s3478_s11 = smov 64   ;;  %s3479_s19 = smov 4  }
 0x219   : > { %3133 = dma.vmem_to_hbm [thread:$0]  (%p3540_p4), %s4181_s23, 8192, %s4179_s28, %s4193_s15, %s3478_s11, %s3478_s11, %s3479_s19  }
 0x21a PF: > { %p3139_p2 = scmp.ge.s32.totalorder %s3473_s17, 2  ;;  %s2552_s21 = sand.u32 1, %s3453_s12  }
 0x21b   : > { %s2553_s26 = scalar_lea.sflag [#allocation3], %s2552_s21 }
 0x21c   : > { %p3136_p3 = pnand %p3139_p2, %p3547_p8 }
 0x21e   : > { %3448 = dma.done.wait (!%p3136_p3), %s2553_s26, 8192  }
 0x21f   : > { %3450 = vsyncadd (!%p3136_p3), %s2553_s26, 4294959104  ;;  %s16_s17 = sadd.s32 1, %s3473_s17   ;;  %s4245_s12 = smov %s3457_s13 }
 0x220   : > { %p13_p5 = scmp.ge.s32.totalorder %s16_s17, 4   ;;  %s4246_s13 = smov %s3461_s14 }
 0x221   : > { %s4247_s14 = smov %s3553_s25  ;;  %s4248_s15 = smov %s3469_s16 }
 0x222   : > { %s4249_s16 = smov %s4251_s20  ;;  %15 = sbr.rel (!%p13_p5) target bundleno = 4 (0x4), region = 73 }
 0x229   :  { %2558 = vsyncpa [#allocation3], 1 }
 0x22a   :  { %2560 = vsyncpa [#allocation3 + $0x1], 1 }

</bundles_post_ra>
